<compile_context>
chip_gen: v5e
topology: v5e:2x2
jax: 0.10.0
libtpu: 0.0.40
codegen_flags: <defaults>
</compile_context>

<pallas_src>
import functools

import jax
import jax.numpy as jnp
from jax.experimental import pallas as pl
from jax.experimental.pallas import tpu as pltpu

# ---------------- configuration (mirrors DETRLoss defaults, small synthetic shapes) -----------
NC = 16                 # number of classes
L = 3                   # decoder layers: last is main, first L-1 are auxiliary
BS = 2                  # batch size
NQ = 8                  # queries per image
GT_GROUPS = [3, 2]      # ground truths per image
N_GT = sum(GT_GROUPS)

LOSS_GAIN = {"class": 1.0, "bbox": 5.0, "giou": 2.0}
GAMMA = 1.5             # FocalLoss gamma
ALPHA = 0.25            # FocalLoss alpha
EPS = 1e-7              # bbox_iou eps


def _detr_loss_kernel(bidx_ref, sidx_ref, didx_ref, gtcls_ref,
                      scores_ref, pboxes_ref, gboxes_ref, out_ref,
                      *, num_layers, nq, nc, qn, n_gt, num_matches,
                      class_gain, bbox_gain, giou_gain):
    """All decoder layers in one invocation: focal classification + L1 + GIoU losses."""
    # ---- build (once, shared across layers): target one-hot, assigned GT boxes, match mask ----
    row_c = jax.lax.broadcasted_iota(jnp.int32, (qn, nc), 0)
    col_c = jax.lax.broadcasted_iota(jnp.int32, (qn, nc), 1)
    targets = jnp.full((qn, nc), nc, dtype=jnp.int32)        # sentinel 'nc' = background

    row_b = jax.lax.broadcasted_iota(jnp.int32, (qn, 4), 0)
    grow = jax.lax.broadcasted_iota(jnp.int32, (n_gt, 4), 0)
    gboxes = gboxes_ref[...]                                  # (n_gt, 4) gt boxes (xywh)

    gt_assigned = jnp.zeros((qn, 4), jnp.float32)             # gt box scattered to its query row
    match_mask = jnp.zeros((qn, 4), jnp.float32)              # 1.0 on matched query rows

    for m in range(num_matches):                              # static unroll (tiny N)
        q_m = bidx_ref[m] * nq + sidx_ref[m]                  # flat matched query index (SMEM)
        d_m = didx_ref[m]                                     # global gt index (SMEM)
        c_m = gtcls_ref[d_m]                                  # matched gt class (SMEM)
        targets = jnp.where(row_c == q_m, c_m, targets)
        # gather gt row d_m with a mask+sublane-reduce (no dynamic VMEM slicing)
        g_row = jnp.sum(jnp.where(grow == d_m, gboxes, 0.0), axis=0, keepdims=True)   # (1, 4)
        sel = row_b == q_m
        gt_assigned = jnp.where(sel, g_row, gt_assigned)
        match_mask = jnp.where(sel, 1.0, match_mask)

    one_hot = (col_c == targets).astype(jnp.float32)          # (qn, nc)
    inv_den = 1.0 / max(num_matches, 1)

    # ---- per-layer losses (static unroll over decoder layers) ----
    for layer in range(num_layers):
        p = scores_ref[layer]                                 # (qn, nc) logits
        # EUP-lean focal loss: softplus once; bce = sp - p*y; sigmoid(p) = exp(p - sp)
        sp = jnp.maximum(p, 0.0) + jnp.log1p(jnp.exp(-jnp.abs(p)))
        bce = sp - p * one_hot
        prob = jnp.exp(p - sp)
        p_t = one_hot * prob + (1.0 - one_hot) * (1.0 - prob)
        d = 1.0 - p_t
        modulating = d * jnp.sqrt(d)                          # (1 - p_t) ** 1.5
        alpha_factor = one_hot * ALPHA + (1.0 - one_hot) * (1.0 - ALPHA)
        fl = bce * modulating * alpha_factor
        # FocalLoss: loss.mean(1).sum() == sum/nq; DETRLoss then / (max(num_gts,1)/nq)
        out_ref[layer, 0] = jnp.sum(fl) * (class_gain * inv_den)

        if num_matches > 0:
            pb = pboxes_ref[layer]                            # (qn, 4) predicted xywh
            # L1 over matched pairs only
            l1 = jnp.sum(jnp.abs(pb - gt_assigned) * match_mask)
            out_ref[layer, 1] = bbox_gain * l1 * inv_den

            # GIoU (xywh -> xyxy), masked to matched rows
            px, py, pw, ph = pb[:, 0:1], pb[:, 1:2], pb[:, 2:3], pb[:, 3:4]
            gx, gy, gw, gh = (gt_assigned[:, 0:1], gt_assigned[:, 1:2],
                              gt_assigned[:, 2:3], gt_assigned[:, 3:4])
            b1_x1, b1_x2 = px - pw * 0.5, px + pw * 0.5
            b1_y1, b1_y2 = py - ph * 0.5, py + ph * 0.5
            b2_x1, b2_x2 = gx - gw * 0.5, gx + gw * 0.5
            b2_y1, b2_y2 = gy - gh * 0.5, gy + gh * 0.5
            inter = (jnp.maximum(jnp.minimum(b1_x2, b2_x2) - jnp.maximum(b1_x1, b2_x1), 0.0) *
                     jnp.maximum(jnp.minimum(b1_y2, b2_y2) - jnp.maximum(b1_y1, b2_y1), 0.0))
            union = pw * ph + gw * gh - inter + EPS
            iou = inter / union
            cw = jnp.maximum(b1_x2, b2_x2) - jnp.minimum(b1_x1, b2_x1)
            ch = jnp.maximum(b1_y2, b2_y2) - jnp.minimum(b1_y1, b2_y1)
            c_area = cw * ch + EPS
            giou = iou - (c_area - union) / c_area
            out_ref[layer, 2] = (giou_gain *
                                 jnp.sum((1.0 - giou) * match_mask[:, 0:1]) * inv_den)
        else:
            out_ref[layer, 1] = jnp.float32(0.0)
            out_ref[layer, 2] = jnp.float32(0.0)


def detr_loss(pred_bboxes, pred_scores, batch, match_indices, aux_loss=True):
    """JAX/Pallas equivalent of DETRLoss.forward with precomputed match_indices.

    pred_bboxes: (L, BS, NQ, 4)   pred_scores: (L, BS, NQ, NC)
    batch: {'cls': (N_GT,), 'bboxes': (N_GT, 4), 'gt_groups': list[int]}
    match_indices: list of (src_idx, dst_idx) per image; dst_idx are global gt indices.
    """
    gt_cls, gt_bboxes = batch["cls"], batch["bboxes"]
    num_layers, bs, nq, nc = pred_scores.shape
    qn = bs * nq
    n_gt = int(gt_bboxes.shape[0])

    if n_gt > 0:
        batch_idx = jnp.concatenate(
            [jnp.full((int(src.shape[0]),), i, dtype=jnp.int32)
             for i, (src, _) in enumerate(match_indices)])
        src_idx = jnp.concatenate([src.astype(jnp.int32) for src, _ in match_indices])
        dst_idx = jnp.concatenate([dst.astype(jnp.int32) for _, dst in match_indices])
        num_matches = int(batch_idx.shape[0])
        gt_cls_i = gt_cls.astype(jnp.int32)
        gt_boxes = gt_bboxes.astype(jnp.float32)
    else:
        # Degenerate no-GT case: dummy 1-element SMEM arrays; static num_matches=0 makes the
        # kernel skip all match-dependent work and emit zero bbox/giou losses (matches PyTorch).
        batch_idx = jnp.zeros((1,), jnp.int32)
        src_idx = jnp.zeros((1,), jnp.int32)
        dst_idx = jnp.zeros((1,), jnp.int32)
        num_matches = 0
        gt_cls_i = jnp.zeros((1,), jnp.int32)
        gt_boxes = jnp.zeros((1, 4), jnp.float32)

    # Only layout-free reshapes on the host; all gather/one-hot work happens in-kernel.
    scores = pred_scores.reshape(num_layers, qn, nc).astype(jnp.float32)
    pboxes = pred_bboxes.reshape(num_layers, qn, 4).astype(jnp.float32)

    kernel = functools.partial(
        _detr_loss_kernel,
        num_layers=num_layers, nq=nq, nc=nc, qn=qn,
        n_gt=int(gt_boxes.shape[0]), num_matches=num_matches,
        class_gain=float(LOSS_GAIN["class"]),
        bbox_gain=float(LOSS_GAIN["bbox"]),
        giou_gain=float(LOSS_GAIN["giou"]),
    )

    out = pl.pallas_call(
        kernel,
        out_shape=jax.ShapeDtypeStruct((num_layers, 3), jnp.float32),
        in_specs=[
            pl.BlockSpec(memory_space=pltpu.MemorySpace.SMEM),   # batch_idx
            pl.BlockSpec(memory_space=pltpu.MemorySpace.SMEM),   # src_idx
            pl.BlockSpec(memory_space=pltpu.MemorySpace.SMEM),   # dst_idx
            pl.BlockSpec(memory_space=pltpu.MemorySpace.SMEM),   # gt classes
            pl.BlockSpec(memory_space=pltpu.MemorySpace.VMEM),   # scores   (L, QN, NC)
            pl.BlockSpec(memory_space=pltpu.MemorySpace.VMEM),   # pred boxes (L, QN, 4)
            pl.BlockSpec(memory_space=pltpu.MemorySpace.VMEM),   # gt boxes (N_GT, 4)
        ],
        out_specs=pl.BlockSpec(memory_space=pltpu.MemorySpace.SMEM),  # (L, 3) scalar losses
    )(batch_idx, src_idx, dst_idx, gt_cls_i, scores, pboxes, gt_boxes)

    losses = {
        "loss_class": out[-1, 0],
        "loss_bbox": out[-1, 1],
        "loss_giou": out[-1, 2],
    }
    if aux_loss and num_layers > 1:
        aux = jnp.sum(out[:-1], axis=0)
        losses.update({
            "loss_class_aux": aux[0],
            "loss_bbox_aux": aux[1],
            "loss_giou_aux": aux[2],
        })
    return losses


if __name__ == "__main__":
    key = jax.random.PRNGKey(0)
    k1, k2, k3, k4 = jax.random.split(key, 4)

    # Synthetic, deterministic inputs (xywh boxes in [0, 1], raw class logits).
    pred_bboxes = jax.nn.sigmoid(jax.random.normal(k1, (L, BS, NQ, 4), jnp.float32))
    pred_scores = jax.random.normal(k2, (L, BS, NQ, NC), jnp.float32)
    gt_bboxes = jax.random.uniform(k3, (N_GT, 4), jnp.float32, minval=0.1, maxval=0.9)
    gt_cls = jax.random.randint(k4, (N_GT,), 0, NC, dtype=jnp.int32)

    batch = {"cls": gt_cls, "bboxes": gt_bboxes, "gt_groups": GT_GROUPS}

    # Deterministic precomputed matches (query index, global gt index) per image.
    match_indices = [
        (jnp.array([1, 4, 6], dtype=jnp.int32), jnp.array([0, 1, 2], dtype=jnp.int32)),
        (jnp.array([0, 3], dtype=jnp.int32), jnp.array([3, 4], dtype=jnp.int32)),
    ]

    losses = detr_loss(pred_bboxes, pred_scores, batch, match_indices, aux_loss=True)
    losses = jax.block_until_ready(losses)
    print("KERNEL_OK")
</pallas_src>

<mosaic_0001>
module attributes {stable_mosaic.version = 11 : i64} {
  func.func @_detr_loss_kernel(%arg0: memref<5xi32, #tpu.memory_space<smem>>, %arg1: memref<5xi32, #tpu.memory_space<smem>>, %arg2: memref<5xi32, #tpu.memory_space<smem>>, %arg3: memref<5xi32, #tpu.memory_space<smem>>, %arg4: memref<3x16x16xf32, #tpu.memory_space<vmem>>, %arg5: memref<3x16x4xf32, #tpu.memory_space<vmem>>, %arg6: memref<5x4xf32, #tpu.memory_space<vmem>>, %arg7: memref<3x3xf32, #tpu.memory_space<smem>>) attributes {dimension_semantics = [], scalar_prefetch = 0 : i64, scratch_operands = 0 : i64, tpu.core_type = #tpu.core_type<tc>} {
    %0 = tpu.iota {dimensions = array<i32: 0>} : vector<16x16xi32>
    %1 = tpu.iota {dimensions = array<i32: 1>} : vector<16x16xi32>
    %c16_i32 = arith.constant 16 : i32
    %2 = vector.broadcast %c16_i32 : i32 to vector<16x16xi32>
    %3 = tpu.iota {dimensions = array<i32: 0>} : vector<16x4xi32>
    %4 = tpu.iota {dimensions = array<i32: 0>} : vector<5x4xi32>
    %c0 = arith.constant 0 : index
    %c0_0 = arith.constant 0 : index
    %5 = vector.load %arg6[%c0, %c0_0] : memref<5x4xf32, #tpu.memory_space<vmem>>, vector<5x4xf32>
    %cst = arith.constant 0.000000e+00 : f32
    %6 = vector.broadcast %cst : f32 to vector<16x4xf32>
    %cst_1 = arith.constant 0.000000e+00 : f32
    %7 = vector.broadcast %cst_1 : f32 to vector<16x4xf32>
    %c0_2 = arith.constant 0 : index
    %8 = memref.load %arg0[%c0_2] : memref<5xi32, #tpu.memory_space<smem>>
    %c8_i32 = arith.constant 8 : i32
    %9 = arith.muli %8, %c8_i32 : i32
    %c0_3 = arith.constant 0 : index
    %10 = memref.load %arg1[%c0_3] : memref<5xi32, #tpu.memory_space<smem>>
    %11 = arith.addi %9, %10 : i32
    %c0_4 = arith.constant 0 : index
    %12 = memref.load %arg2[%c0_4] : memref<5xi32, #tpu.memory_space<smem>>
    %13 = arith.index_cast %12 : i32 to index
    %14 = memref.load %arg3[%13] : memref<5xi32, #tpu.memory_space<smem>>
    %15 = vector.broadcast %11 : i32 to vector<16x16xi32>
    %16 = arith.cmpi eq, %0, %15 : vector<16x16xi32>
    %17 = vector.broadcast %14 : i32 to vector<16x16xi32>
    %18 = arith.select %16, %17, %2 : vector<16x16xi1>, vector<16x16xi32>
    %19 = vector.broadcast %12 : i32 to vector<5x4xi32>
    %20 = arith.cmpi eq, %4, %19 : vector<5x4xi32>
    %cst_5 = arith.constant 0.000000e+00 : f32
    %21 = vector.broadcast %cst_5 : f32 to vector<5x4xf32>
    %22 = arith.select %20, %5, %21 : vector<5x4xi1>, vector<5x4xf32>
    %cst_6 = arith.constant dense<0.000000e+00> : vector<4xf32>
    %23 = vector.multi_reduction <add>, %22, %cst_6 [0] : vector<5x4xf32> to vector<4xf32>
    %24 = vector.shape_cast %23 : vector<4xf32> to vector<1x4xf32>
    %25 = vector.broadcast %11 : i32 to vector<16x4xi32>
    %26 = arith.cmpi eq, %3, %25 : vector<16x4xi32>
    %27 = vector.shape_cast %24 : vector<1x4xf32> to vector<1x4xf32>
    %28 = vector.broadcast %27 : vector<1x4xf32> to vector<16x4xf32>
    %29 = arith.select %26, %28, %6 : vector<16x4xi1>, vector<16x4xf32>
    %cst_7 = arith.constant 1.000000e+00 : f32
    %30 = vector.broadcast %cst_7 : f32 to vector<16x4xf32>
    %31 = arith.select %26, %30, %7 : vector<16x4xi1>, vector<16x4xf32>
    %c1 = arith.constant 1 : index
    %32 = memref.load %arg0[%c1] : memref<5xi32, #tpu.memory_space<smem>>
    %c8_i32_8 = arith.constant 8 : i32
    %33 = arith.muli %32, %c8_i32_8 : i32
    %c1_9 = arith.constant 1 : index
    %34 = memref.load %arg1[%c1_9] : memref<5xi32, #tpu.memory_space<smem>>
    %35 = arith.addi %33, %34 : i32
    %c1_10 = arith.constant 1 : index
    %36 = memref.load %arg2[%c1_10] : memref<5xi32, #tpu.memory_space<smem>>
    %37 = arith.index_cast %36 : i32 to index
    %38 = memref.load %arg3[%37] : memref<5xi32, #tpu.memory_space<smem>>
    %39 = vector.broadcast %35 : i32 to vector<16x16xi32>
    %40 = arith.cmpi eq, %0, %39 : vector<16x16xi32>
    %41 = vector.broadcast %38 : i32 to vector<16x16xi32>
    %42 = arith.select %40, %41, %18 : vector<16x16xi1>, vector<16x16xi32>
    %43 = vector.broadcast %36 : i32 to vector<5x4xi32>
    %44 = arith.cmpi eq, %4, %43 : vector<5x4xi32>
    %cst_11 = arith.constant 0.000000e+00 : f32
    %45 = vector.broadcast %cst_11 : f32 to vector<5x4xf32>
    %46 = arith.select %44, %5, %45 : vector<5x4xi1>, vector<5x4xf32>
    %cst_12 = arith.constant dense<0.000000e+00> : vector<4xf32>
    %47 = vector.multi_reduction <add>, %46, %cst_12 [0] : vector<5x4xf32> to vector<4xf32>
    %48 = vector.shape_cast %47 : vector<4xf32> to vector<1x4xf32>
    %49 = vector.broadcast %35 : i32 to vector<16x4xi32>
    %50 = arith.cmpi eq, %3, %49 : vector<16x4xi32>
    %51 = vector.shape_cast %48 : vector<1x4xf32> to vector<1x4xf32>
    %52 = vector.broadcast %51 : vector<1x4xf32> to vector<16x4xf32>
    %53 = arith.select %50, %52, %29 : vector<16x4xi1>, vector<16x4xf32>
    %cst_13 = arith.constant 1.000000e+00 : f32
    %54 = vector.broadcast %cst_13 : f32 to vector<16x4xf32>
    %55 = arith.select %50, %54, %31 : vector<16x4xi1>, vector<16x4xf32>
    %c2 = arith.constant 2 : index
    %56 = memref.load %arg0[%c2] : memref<5xi32, #tpu.memory_space<smem>>
    %c8_i32_14 = arith.constant 8 : i32
    %57 = arith.muli %56, %c8_i32_14 : i32
    %c2_15 = arith.constant 2 : index
    %58 = memref.load %arg1[%c2_15] : memref<5xi32, #tpu.memory_space<smem>>
    %59 = arith.addi %57, %58 : i32
    %c2_16 = arith.constant 2 : index
    %60 = memref.load %arg2[%c2_16] : memref<5xi32, #tpu.memory_space<smem>>
    %61 = arith.index_cast %60 : i32 to index
    %62 = memref.load %arg3[%61] : memref<5xi32, #tpu.memory_space<smem>>
    %63 = vector.broadcast %59 : i32 to vector<16x16xi32>
    %64 = arith.cmpi eq, %0, %63 : vector<16x16xi32>
    %65 = vector.broadcast %62 : i32 to vector<16x16xi32>
    %66 = arith.select %64, %65, %42 : vector<16x16xi1>, vector<16x16xi32>
    %67 = vector.broadcast %60 : i32 to vector<5x4xi32>
    %68 = arith.cmpi eq, %4, %67 : vector<5x4xi32>
    %cst_17 = arith.constant 0.000000e+00 : f32
    %69 = vector.broadcast %cst_17 : f32 to vector<5x4xf32>
    %70 = arith.select %68, %5, %69 : vector<5x4xi1>, vector<5x4xf32>
    %cst_18 = arith.constant dense<0.000000e+00> : vector<4xf32>
    %71 = vector.multi_reduction <add>, %70, %cst_18 [0] : vector<5x4xf32> to vector<4xf32>
    %72 = vector.shape_cast %71 : vector<4xf32> to vector<1x4xf32>
    %73 = vector.broadcast %59 : i32 to vector<16x4xi32>
    %74 = arith.cmpi eq, %3, %73 : vector<16x4xi32>
    %75 = vector.shape_cast %72 : vector<1x4xf32> to vector<1x4xf32>
    %76 = vector.broadcast %75 : vector<1x4xf32> to vector<16x4xf32>
    %77 = arith.select %74, %76, %53 : vector<16x4xi1>, vector<16x4xf32>
    %cst_19 = arith.constant 1.000000e+00 : f32
    %78 = vector.broadcast %cst_19 : f32 to vector<16x4xf32>
    %79 = arith.select %74, %78, %55 : vector<16x4xi1>, vector<16x4xf32>
    %c3 = arith.constant 3 : index
    %80 = memref.load %arg0[%c3] : memref<5xi32, #tpu.memory_space<smem>>
    %c8_i32_20 = arith.constant 8 : i32
    %81 = arith.muli %80, %c8_i32_20 : i32
    %c3_21 = arith.constant 3 : index
    %82 = memref.load %arg1[%c3_21] : memref<5xi32, #tpu.memory_space<smem>>
    %83 = arith.addi %81, %82 : i32
    %c3_22 = arith.constant 3 : index
    %84 = memref.load %arg2[%c3_22] : memref<5xi32, #tpu.memory_space<smem>>
    %85 = arith.index_cast %84 : i32 to index
    %86 = memref.load %arg3[%85] : memref<5xi32, #tpu.memory_space<smem>>
    %87 = vector.broadcast %83 : i32 to vector<16x16xi32>
    %88 = arith.cmpi eq, %0, %87 : vector<16x16xi32>
    %89 = vector.broadcast %86 : i32 to vector<16x16xi32>
    %90 = arith.select %88, %89, %66 : vector<16x16xi1>, vector<16x16xi32>
    %91 = vector.broadcast %84 : i32 to vector<5x4xi32>
    %92 = arith.cmpi eq, %4, %91 : vector<5x4xi32>
    %cst_23 = arith.constant 0.000000e+00 : f32
    %93 = vector.broadcast %cst_23 : f32 to vector<5x4xf32>
    %94 = arith.select %92, %5, %93 : vector<5x4xi1>, vector<5x4xf32>
    %cst_24 = arith.constant dense<0.000000e+00> : vector<4xf32>
    %95 = vector.multi_reduction <add>, %94, %cst_24 [0] : vector<5x4xf32> to vector<4xf32>
    %96 = vector.shape_cast %95 : vector<4xf32> to vector<1x4xf32>
    %97 = vector.broadcast %83 : i32 to vector<16x4xi32>
    %98 = arith.cmpi eq, %3, %97 : vector<16x4xi32>
    %99 = vector.shape_cast %96 : vector<1x4xf32> to vector<1x4xf32>
    %100 = vector.broadcast %99 : vector<1x4xf32> to vector<16x4xf32>
    %101 = arith.select %98, %100, %77 : vector<16x4xi1>, vector<16x4xf32>
    %cst_25 = arith.constant 1.000000e+00 : f32
    %102 = vector.broadcast %cst_25 : f32 to vector<16x4xf32>
    %103 = arith.select %98, %102, %79 : vector<16x4xi1>, vector<16x4xf32>
    %c4 = arith.constant 4 : index
    %104 = memref.load %arg0[%c4] : memref<5xi32, #tpu.memory_space<smem>>
    %c8_i32_26 = arith.constant 8 : i32
    %105 = arith.muli %104, %c8_i32_26 : i32
    %c4_27 = arith.constant 4 : index
    %106 = memref.load %arg1[%c4_27] : memref<5xi32, #tpu.memory_space<smem>>
    %107 = arith.addi %105, %106 : i32
    %c4_28 = arith.constant 4 : index
    %108 = memref.load %arg2[%c4_28] : memref<5xi32, #tpu.memory_space<smem>>
    %109 = arith.index_cast %108 : i32 to index
    %110 = memref.load %arg3[%109] : memref<5xi32, #tpu.memory_space<smem>>
    %111 = vector.broadcast %107 : i32 to vector<16x16xi32>
    %112 = arith.cmpi eq, %0, %111 : vector<16x16xi32>
    %113 = vector.broadcast %110 : i32 to vector<16x16xi32>
    %114 = arith.select %112, %113, %90 : vector<16x16xi1>, vector<16x16xi32>
    %115 = vector.broadcast %108 : i32 to vector<5x4xi32>
    %116 = arith.cmpi eq, %4, %115 : vector<5x4xi32>
    %cst_29 = arith.constant 0.000000e+00 : f32
    %117 = vector.broadcast %cst_29 : f32 to vector<5x4xf32>
    %118 = arith.select %116, %5, %117 : vector<5x4xi1>, vector<5x4xf32>
    %cst_30 = arith.constant dense<0.000000e+00> : vector<4xf32>
    %119 = vector.multi_reduction <add>, %118, %cst_30 [0] : vector<5x4xf32> to vector<4xf32>
    %120 = vector.shape_cast %119 : vector<4xf32> to vector<1x4xf32>
    %121 = vector.broadcast %107 : i32 to vector<16x4xi32>
    %122 = arith.cmpi eq, %3, %121 : vector<16x4xi32>
    %123 = vector.shape_cast %120 : vector<1x4xf32> to vector<1x4xf32>
    %124 = vector.broadcast %123 : vector<1x4xf32> to vector<16x4xf32>
    %125 = arith.select %122, %124, %101 : vector<16x4xi1>, vector<16x4xf32>
    %cst_31 = arith.constant 1.000000e+00 : f32
    %126 = vector.broadcast %cst_31 : f32 to vector<16x4xf32>
    %127 = arith.select %122, %126, %103 : vector<16x4xi1>, vector<16x4xf32>
    %128 = arith.cmpi eq, %1, %114 : vector<16x16xi32>
    %129 = arith.extui %128 : vector<16x16xi1> to vector<16x16xi32>
    %130 = arith.sitofp %129 : vector<16x16xi32> to vector<16x16xf32>
    %c0_32 = arith.constant 0 : index
    %c0_33 = arith.constant 0 : index
    %c0_34 = arith.constant 0 : index
    %131 = vector.load %arg4[%c0_32, %c0_33, %c0_34] : memref<3x16x16xf32, #tpu.memory_space<vmem>>, vector<1x16x16xf32>
    %132 = vector.shape_cast %131 : vector<1x16x16xf32> to vector<16x16xf32>
    %cst_35 = arith.constant 0.000000e+00 : f32
    %133 = vector.broadcast %cst_35 : f32 to vector<16x16xf32>
    %134 = arith.maximumf %132, %133 : vector<16x16xf32>
    %135 = math.absf %132 : vector<16x16xf32>
    %cst_36 = arith.constant 0.000000e+00 : f32
    %136 = vector.broadcast %cst_36 : f32 to vector<16x16xf32>
    %137 = arith.subf %136, %135 : vector<16x16xf32>
    %138 = math.exp %137 : vector<16x16xf32>
    %139 = math.log1p %138 : vector<16x16xf32>
    %140 = arith.addf %134, %139 : vector<16x16xf32>
    %141 = arith.mulf %132, %130 : vector<16x16xf32>
    %142 = arith.subf %140, %141 : vector<16x16xf32>
    %143 = arith.subf %132, %140 : vector<16x16xf32>
    %144 = math.exp %143 : vector<16x16xf32>
    %145 = arith.mulf %130, %144 : vector<16x16xf32>
    %cst_37 = arith.constant 1.000000e+00 : f32
    %146 = vector.broadcast %cst_37 : f32 to vector<16x16xf32>
    %147 = arith.subf %146, %130 : vector<16x16xf32>
    %cst_38 = arith.constant 1.000000e+00 : f32
    %148 = vector.broadcast %cst_38 : f32 to vector<16x16xf32>
    %149 = arith.subf %148, %144 : vector<16x16xf32>
    %150 = arith.mulf %147, %149 : vector<16x16xf32>
    %151 = arith.addf %145, %150 : vector<16x16xf32>
    %cst_39 = arith.constant 1.000000e+00 : f32
    %152 = vector.broadcast %cst_39 : f32 to vector<16x16xf32>
    %153 = arith.subf %152, %151 : vector<16x16xf32>
    %154 = math.sqrt %153 : vector<16x16xf32>
    %155 = arith.mulf %153, %154 : vector<16x16xf32>
    %cst_40 = arith.constant 2.500000e-01 : f32
    %156 = vector.broadcast %cst_40 : f32 to vector<16x16xf32>
    %157 = arith.mulf %130, %156 : vector<16x16xf32>
    %cst_41 = arith.constant 1.000000e+00 : f32
    %158 = vector.broadcast %cst_41 : f32 to vector<16x16xf32>
    %159 = arith.subf %158, %130 : vector<16x16xf32>
    %cst_42 = arith.constant 7.500000e-01 : f32
    %160 = vector.broadcast %cst_42 : f32 to vector<16x16xf32>
    %161 = arith.mulf %159, %160 : vector<16x16xf32>
    %162 = arith.addf %157, %161 : vector<16x16xf32>
    %163 = arith.mulf %142, %155 : vector<16x16xf32>
    %164 = arith.mulf %163, %162 : vector<16x16xf32>
    %165 = vector.shape_cast %164 : vector<16x16xf32> to vector<1x16x16xf32>
    %cst_43 = arith.constant dense<0.000000e+00> : vector<1xf32>
    %166 = vector.multi_reduction <add>, %165, %cst_43 [1, 2] : vector<1x16x16xf32> to vector<1xf32>
    %167 = vector.shape_cast %166 : vector<1xf32> to vector<1x1x1xf32>
    %168 = vector.extract %167[0, 0, 0] : f32 from vector<1x1x1xf32>
    %cst_44 = arith.constant 2.000000e-01 : f32
    %169 = arith.mulf %168, %cst_44 : f32
    %c0_45 = arith.constant 0 : index
    %c0_46 = arith.constant 0 : index
    %170 = memref.load %arg7[%c0_45, %c0_46] : memref<3x3xf32, #tpu.memory_space<smem>>
    memref.store %169, %arg7[%c0_45, %c0_46] : memref<3x3xf32, #tpu.memory_space<smem>>
    %c0_47 = arith.constant 0 : index
    %c0_48 = arith.constant 0 : index
    %c0_49 = arith.constant 0 : index
    %171 = vector.load %arg5[%c0_47, %c0_48, %c0_49] : memref<3x16x4xf32, #tpu.memory_space<vmem>>, vector<1x16x4xf32>
    %172 = vector.shape_cast %171 : vector<1x16x4xf32> to vector<16x4xf32>
    %173 = arith.subf %172, %125 : vector<16x4xf32>
    %174 = math.absf %173 : vector<16x4xf32>
    %175 = arith.mulf %174, %127 : vector<16x4xf32>
    %176 = vector.shape_cast %175 : vector<16x4xf32> to vector<1x16x4xf32>
    %cst_50 = arith.constant dense<0.000000e+00> : vector<1xf32>
    %177 = vector.multi_reduction <add>, %176, %cst_50 [1, 2] : vector<1x16x4xf32> to vector<1xf32>
    %178 = vector.shape_cast %177 : vector<1xf32> to vector<1x1x1xf32>
    %179 = vector.extract %178[0, 0, 0] : f32 from vector<1x1x1xf32>
    %cst_51 = arith.constant 5.000000e+00 : f32
    %180 = arith.mulf %cst_51, %179 : f32
    %cst_52 = arith.constant 2.000000e-01 : f32
    %181 = arith.mulf %180, %cst_52 : f32
    %c0_53 = arith.constant 0 : index
    %c1_54 = arith.constant 1 : index
    %182 = memref.load %arg7[%c0_53, %c1_54] : memref<3x3xf32, #tpu.memory_space<smem>>
    memref.store %181, %arg7[%c0_53, %c1_54] : memref<3x3xf32, #tpu.memory_space<smem>>
    %183 = vector.extract_strided_slice %172 {offsets = [0, 0], sizes = [16, 1], strides = [1, 1]} : vector<16x4xf32> to vector<16x1xf32>
    %184 = vector.extract_strided_slice %172 {offsets = [0, 1], sizes = [16, 1], strides = [1, 1]} : vector<16x4xf32> to vector<16x1xf32>
    %185 = vector.extract_strided_slice %172 {offsets = [0, 2], sizes = [16, 1], strides = [1, 1]} : vector<16x4xf32> to vector<16x1xf32>
    %186 = vector.extract_strided_slice %172 {offsets = [0, 3], sizes = [16, 1], strides = [1, 1]} : vector<16x4xf32> to vector<16x1xf32>
    %187 = vector.extract_strided_slice %125 {offsets = [0, 0], sizes = [16, 1], strides = [1, 1]} : vector<16x4xf32> to vector<16x1xf32>
    %188 = vector.extract_strided_slice %125 {offsets = [0, 1], sizes = [16, 1], strides = [1, 1]} : vector<16x4xf32> to vector<16x1xf32>
    %189 = vector.extract_strided_slice %125 {offsets = [0, 2], sizes = [16, 1], strides = [1, 1]} : vector<16x4xf32> to vector<16x1xf32>
    %190 = vector.extract_strided_slice %125 {offsets = [0, 3], sizes = [16, 1], strides = [1, 1]} : vector<16x4xf32> to vector<16x1xf32>
    %cst_55 = arith.constant 5.000000e-01 : f32
    %191 = vector.broadcast %cst_55 : f32 to vector<16x1xf32>
    %192 = arith.mulf %185, %191 : vector<16x1xf32>
    %193 = arith.subf %183, %192 : vector<16x1xf32>
    %cst_56 = arith.constant 5.000000e-01 : f32
    %194 = vector.broadcast %cst_56 : f32 to vector<16x1xf32>
    %195 = arith.mulf %185, %194 : vector<16x1xf32>
    %196 = arith.addf %183, %195 : vector<16x1xf32>
    %cst_57 = arith.constant 5.000000e-01 : f32
    %197 = vector.broadcast %cst_57 : f32 to vector<16x1xf32>
    %198 = arith.mulf %186, %197 : vector<16x1xf32>
    %199 = arith.subf %184, %198 : vector<16x1xf32>
    %cst_58 = arith.constant 5.000000e-01 : f32
    %200 = vector.broadcast %cst_58 : f32 to vector<16x1xf32>
    %201 = arith.mulf %186, %200 : vector<16x1xf32>
    %202 = arith.addf %184, %201 : vector<16x1xf32>
    %cst_59 = arith.constant 5.000000e-01 : f32
    %203 = vector.broadcast %cst_59 : f32 to vector<16x1xf32>
    %204 = arith.mulf %189, %203 : vector<16x1xf32>
    %205 = arith.subf %187, %204 : vector<16x1xf32>
    %cst_60 = arith.constant 5.000000e-01 : f32
    %206 = vector.broadcast %cst_60 : f32 to vector<16x1xf32>
    %207 = arith.mulf %189, %206 : vector<16x1xf32>
    %208 = arith.addf %187, %207 : vector<16x1xf32>
    %cst_61 = arith.constant 5.000000e-01 : f32
    %209 = vector.broadcast %cst_61 : f32 to vector<16x1xf32>
    %210 = arith.mulf %190, %209 : vector<16x1xf32>
    %211 = arith.subf %188, %210 : vector<16x1xf32>
    %cst_62 = arith.constant 5.000000e-01 : f32
    %212 = vector.broadcast %cst_62 : f32 to vector<16x1xf32>
    %213 = arith.mulf %190, %212 : vector<16x1xf32>
    %214 = arith.addf %188, %213 : vector<16x1xf32>
    %215 = arith.minimumf %196, %208 : vector<16x1xf32>
    %216 = arith.maximumf %193, %205 : vector<16x1xf32>
    %217 = arith.subf %215, %216 : vector<16x1xf32>
    %cst_63 = arith.constant 0.000000e+00 : f32
    %218 = vector.broadcast %cst_63 : f32 to vector<16x1xf32>
    %219 = arith.maximumf %217, %218 : vector<16x1xf32>
    %220 = arith.minimumf %202, %214 : vector<16x1xf32>
    %221 = arith.maximumf %199, %211 : vector<16x1xf32>
    %222 = arith.subf %220, %221 : vector<16x1xf32>
    %cst_64 = arith.constant 0.000000e+00 : f32
    %223 = vector.broadcast %cst_64 : f32 to vector<16x1xf32>
    %224 = arith.maximumf %222, %223 : vector<16x1xf32>
    %225 = arith.mulf %219, %224 : vector<16x1xf32>
    %226 = arith.mulf %185, %186 : vector<16x1xf32>
    %227 = arith.mulf %189, %190 : vector<16x1xf32>
    %228 = arith.addf %226, %227 : vector<16x1xf32>
    %229 = arith.subf %228, %225 : vector<16x1xf32>
    %cst_65 = arith.constant 1.000000e-07 : f32
    %230 = vector.broadcast %cst_65 : f32 to vector<16x1xf32>
    %231 = arith.addf %229, %230 : vector<16x1xf32>
    %232 = arith.divf %225, %231 : vector<16x1xf32>
    %233 = arith.maximumf %196, %208 : vector<16x1xf32>
    %234 = arith.minimumf %193, %205 : vector<16x1xf32>
    %235 = arith.subf %233, %234 : vector<16x1xf32>
    %236 = arith.maximumf %202, %214 : vector<16x1xf32>
    %237 = arith.minimumf %199, %211 : vector<16x1xf32>
    %238 = arith.subf %236, %237 : vector<16x1xf32>
    %239 = arith.mulf %235, %238 : vector<16x1xf32>
    %cst_66 = arith.constant 1.000000e-07 : f32
    %240 = vector.broadcast %cst_66 : f32 to vector<16x1xf32>
    %241 = arith.addf %239, %240 : vector<16x1xf32>
    %242 = arith.subf %241, %231 : vector<16x1xf32>
    %243 = arith.divf %242, %241 : vector<16x1xf32>
    %244 = arith.subf %232, %243 : vector<16x1xf32>
    %cst_67 = arith.constant 1.000000e+00 : f32
    %245 = vector.broadcast %cst_67 : f32 to vector<16x1xf32>
    %246 = arith.subf %245, %244 : vector<16x1xf32>
    %247 = vector.extract_strided_slice %127 {offsets = [0, 0], sizes = [16, 1], strides = [1, 1]} : vector<16x4xf32> to vector<16x1xf32>
    %248 = arith.mulf %246, %247 : vector<16x1xf32>
    %249 = vector.shape_cast %248 : vector<16x1xf32> to vector<1x16x1xf32>
    %cst_68 = arith.constant dense<0.000000e+00> : vector<1xf32>
    %250 = vector.multi_reduction <add>, %249, %cst_68 [1, 2] : vector<1x16x1xf32> to vector<1xf32>
    %251 = vector.shape_cast %250 : vector<1xf32> to vector<1x1x1xf32>
    %252 = vector.extract %251[0, 0, 0] : f32 from vector<1x1x1xf32>
    %cst_69 = arith.constant 2.000000e+00 : f32
    %253 = arith.mulf %cst_69, %252 : f32
    %cst_70 = arith.constant 2.000000e-01 : f32
    %254 = arith.mulf %253, %cst_70 : f32
    %c0_71 = arith.constant 0 : index
    %c2_72 = arith.constant 2 : index
    %255 = memref.load %arg7[%c0_71, %c2_72] : memref<3x3xf32, #tpu.memory_space<smem>>
    memref.store %254, %arg7[%c0_71, %c2_72] : memref<3x3xf32, #tpu.memory_space<smem>>
    %c1_73 = arith.constant 1 : index
    %c0_74 = arith.constant 0 : index
    %c0_75 = arith.constant 0 : index
    %256 = vector.load %arg4[%c1_73, %c0_74, %c0_75] : memref<3x16x16xf32, #tpu.memory_space<vmem>>, vector<1x16x16xf32>
    %257 = vector.shape_cast %256 : vector<1x16x16xf32> to vector<16x16xf32>
    %cst_76 = arith.constant 0.000000e+00 : f32
    %258 = vector.broadcast %cst_76 : f32 to vector<16x16xf32>
    %259 = arith.maximumf %257, %258 : vector<16x16xf32>
    %260 = math.absf %257 : vector<16x16xf32>
    %cst_77 = arith.constant 0.000000e+00 : f32
    %261 = vector.broadcast %cst_77 : f32 to vector<16x16xf32>
    %262 = arith.subf %261, %260 : vector<16x16xf32>
    %263 = math.exp %262 : vector<16x16xf32>
    %264 = math.log1p %263 : vector<16x16xf32>
    %265 = arith.addf %259, %264 : vector<16x16xf32>
    %266 = arith.mulf %257, %130 : vector<16x16xf32>
    %267 = arith.subf %265, %266 : vector<16x16xf32>
    %268 = arith.subf %257, %265 : vector<16x16xf32>
    %269 = math.exp %268 : vector<16x16xf32>
    %270 = arith.mulf %130, %269 : vector<16x16xf32>
    %cst_78 = arith.constant 1.000000e+00 : f32
    %271 = vector.broadcast %cst_78 : f32 to vector<16x16xf32>
    %272 = arith.subf %271, %130 : vector<16x16xf32>
    %cst_79 = arith.constant 1.000000e+00 : f32
    %273 = vector.broadcast %cst_79 : f32 to vector<16x16xf32>
    %274 = arith.subf %273, %269 : vector<16x16xf32>
    %275 = arith.mulf %272, %274 : vector<16x16xf32>
    %276 = arith.addf %270, %275 : vector<16x16xf32>
    %cst_80 = arith.constant 1.000000e+00 : f32
    %277 = vector.broadcast %cst_80 : f32 to vector<16x16xf32>
    %278 = arith.subf %277, %276 : vector<16x16xf32>
    %279 = math.sqrt %278 : vector<16x16xf32>
    %280 = arith.mulf %278, %279 : vector<16x16xf32>
    %cst_81 = arith.constant 2.500000e-01 : f32
    %281 = vector.broadcast %cst_81 : f32 to vector<16x16xf32>
    %282 = arith.mulf %130, %281 : vector<16x16xf32>
    %cst_82 = arith.constant 1.000000e+00 : f32
    %283 = vector.broadcast %cst_82 : f32 to vector<16x16xf32>
    %284 = arith.subf %283, %130 : vector<16x16xf32>
    %cst_83 = arith.constant 7.500000e-01 : f32
    %285 = vector.broadcast %cst_83 : f32 to vector<16x16xf32>
    %286 = arith.mulf %284, %285 : vector<16x16xf32>
    %287 = arith.addf %282, %286 : vector<16x16xf32>
    %288 = arith.mulf %267, %280 : vector<16x16xf32>
    %289 = arith.mulf %288, %287 : vector<16x16xf32>
    %290 = vector.shape_cast %289 : vector<16x16xf32> to vector<1x16x16xf32>
    %cst_84 = arith.constant dense<0.000000e+00> : vector<1xf32>
    %291 = vector.multi_reduction <add>, %290, %cst_84 [1, 2] : vector<1x16x16xf32> to vector<1xf32>
    %292 = vector.shape_cast %291 : vector<1xf32> to vector<1x1x1xf32>
    %293 = vector.extract %292[0, 0, 0] : f32 from vector<1x1x1xf32>
    %cst_85 = arith.constant 2.000000e-01 : f32
    %294 = arith.mulf %293, %cst_85 : f32
    %c1_86 = arith.constant 1 : index
    %c0_87 = arith.constant 0 : index
    %295 = memref.load %arg7[%c1_86, %c0_87] : memref<3x3xf32, #tpu.memory_space<smem>>
    memref.store %294, %arg7[%c1_86, %c0_87] : memref<3x3xf32, #tpu.memory_space<smem>>
    %c1_88 = arith.constant 1 : index
    %c0_89 = arith.constant 0 : index
    %c0_90 = arith.constant 0 : index
    %296 = vector.load %arg5[%c1_88, %c0_89, %c0_90] : memref<3x16x4xf32, #tpu.memory_space<vmem>>, vector<1x16x4xf32>
    %297 = vector.shape_cast %296 : vector<1x16x4xf32> to vector<16x4xf32>
    %298 = arith.subf %297, %125 : vector<16x4xf32>
    %299 = math.absf %298 : vector<16x4xf32>
    %300 = arith.mulf %299, %127 : vector<16x4xf32>
    %301 = vector.shape_cast %300 : vector<16x4xf32> to vector<1x16x4xf32>
    %cst_91 = arith.constant dense<0.000000e+00> : vector<1xf32>
    %302 = vector.multi_reduction <add>, %301, %cst_91 [1, 2] : vector<1x16x4xf32> to vector<1xf32>
    %303 = vector.shape_cast %302 : vector<1xf32> to vector<1x1x1xf32>
    %304 = vector.extract %303[0, 0, 0] : f32 from vector<1x1x1xf32>
    %cst_92 = arith.constant 5.000000e+00 : f32
    %305 = arith.mulf %cst_92, %304 : f32
    %cst_93 = arith.constant 2.000000e-01 : f32
    %306 = arith.mulf %305, %cst_93 : f32
    %c1_94 = arith.constant 1 : index
    %c1_95 = arith.constant 1 : index
    %307 = memref.load %arg7[%c1_94, %c1_95] : memref<3x3xf32, #tpu.memory_space<smem>>
    memref.store %306, %arg7[%c1_94, %c1_95] : memref<3x3xf32, #tpu.memory_space<smem>>
    %308 = vector.extract_strided_slice %297 {offsets = [0, 0], sizes = [16, 1], strides = [1, 1]} : vector<16x4xf32> to vector<16x1xf32>
    %309 = vector.extract_strided_slice %297 {offsets = [0, 1], sizes = [16, 1], strides = [1, 1]} : vector<16x4xf32> to vector<16x1xf32>
    %310 = vector.extract_strided_slice %297 {offsets = [0, 2], sizes = [16, 1], strides = [1, 1]} : vector<16x4xf32> to vector<16x1xf32>
    %311 = vector.extract_strided_slice %297 {offsets = [0, 3], sizes = [16, 1], strides = [1, 1]} : vector<16x4xf32> to vector<16x1xf32>
    %312 = vector.extract_strided_slice %125 {offsets = [0, 0], sizes = [16, 1], strides = [1, 1]} : vector<16x4xf32> to vector<16x1xf32>
    %313 = vector.extract_strided_slice %125 {offsets = [0, 1], sizes = [16, 1], strides = [1, 1]} : vector<16x4xf32> to vector<16x1xf32>
    %314 = vector.extract_strided_slice %125 {offsets = [0, 2], sizes = [16, 1], strides = [1, 1]} : vector<16x4xf32> to vector<16x1xf32>
    %315 = vector.extract_strided_slice %125 {offsets = [0, 3], sizes = [16, 1], strides = [1, 1]} : vector<16x4xf32> to vector<16x1xf32>
    %cst_96 = arith.constant 5.000000e-01 : f32
    %316 = vector.broadcast %cst_96 : f32 to vector<16x1xf32>
    %317 = arith.mulf %310, %316 : vector<16x1xf32>
    %318 = arith.subf %308, %317 : vector<16x1xf32>
    %cst_97 = arith.constant 5.000000e-01 : f32
    %319 = vector.broadcast %cst_97 : f32 to vector<16x1xf32>
    %320 = arith.mulf %310, %319 : vector<16x1xf32>
    %321 = arith.addf %308, %320 : vector<16x1xf32>
    %cst_98 = arith.constant 5.000000e-01 : f32
    %322 = vector.broadcast %cst_98 : f32 to vector<16x1xf32>
    %323 = arith.mulf %311, %322 : vector<16x1xf32>
    %324 = arith.subf %309, %323 : vector<16x1xf32>
    %cst_99 = arith.constant 5.000000e-01 : f32
    %325 = vector.broadcast %cst_99 : f32 to vector<16x1xf32>
    %326 = arith.mulf %311, %325 : vector<16x1xf32>
    %327 = arith.addf %309, %326 : vector<16x1xf32>
    %cst_100 = arith.constant 5.000000e-01 : f32
    %328 = vector.broadcast %cst_100 : f32 to vector<16x1xf32>
    %329 = arith.mulf %314, %328 : vector<16x1xf32>
    %330 = arith.subf %312, %329 : vector<16x1xf32>
    %cst_101 = arith.constant 5.000000e-01 : f32
    %331 = vector.broadcast %cst_101 : f32 to vector<16x1xf32>
    %332 = arith.mulf %314, %331 : vector<16x1xf32>
    %333 = arith.addf %312, %332 : vector<16x1xf32>
    %cst_102 = arith.constant 5.000000e-01 : f32
    %334 = vector.broadcast %cst_102 : f32 to vector<16x1xf32>
    %335 = arith.mulf %315, %334 : vector<16x1xf32>
    %336 = arith.subf %313, %335 : vector<16x1xf32>
    %cst_103 = arith.constant 5.000000e-01 : f32
    %337 = vector.broadcast %cst_103 : f32 to vector<16x1xf32>
    %338 = arith.mulf %315, %337 : vector<16x1xf32>
    %339 = arith.addf %313, %338 : vector<16x1xf32>
    %340 = arith.minimumf %321, %333 : vector<16x1xf32>
    %341 = arith.maximumf %318, %330 : vector<16x1xf32>
    %342 = arith.subf %340, %341 : vector<16x1xf32>
    %cst_104 = arith.constant 0.000000e+00 : f32
    %343 = vector.broadcast %cst_104 : f32 to vector<16x1xf32>
    %344 = arith.maximumf %342, %343 : vector<16x1xf32>
    %345 = arith.minimumf %327, %339 : vector<16x1xf32>
    %346 = arith.maximumf %324, %336 : vector<16x1xf32>
    %347 = arith.subf %345, %346 : vector<16x1xf32>
    %cst_105 = arith.constant 0.000000e+00 : f32
    %348 = vector.broadcast %cst_105 : f32 to vector<16x1xf32>
    %349 = arith.maximumf %347, %348 : vector<16x1xf32>
    %350 = arith.mulf %344, %349 : vector<16x1xf32>
    %351 = arith.mulf %310, %311 : vector<16x1xf32>
    %352 = arith.mulf %314, %315 : vector<16x1xf32>
    %353 = arith.addf %351, %352 : vector<16x1xf32>
    %354 = arith.subf %353, %350 : vector<16x1xf32>
    %cst_106 = arith.constant 1.000000e-07 : f32
    %355 = vector.broadcast %cst_106 : f32 to vector<16x1xf32>
    %356 = arith.addf %354, %355 : vector<16x1xf32>
    %357 = arith.divf %350, %356 : vector<16x1xf32>
    %358 = arith.maximumf %321, %333 : vector<16x1xf32>
    %359 = arith.minimumf %318, %330 : vector<16x1xf32>
    %360 = arith.subf %358, %359 : vector<16x1xf32>
    %361 = arith.maximumf %327, %339 : vector<16x1xf32>
    %362 = arith.minimumf %324, %336 : vector<16x1xf32>
    %363 = arith.subf %361, %362 : vector<16x1xf32>
    %364 = arith.mulf %360, %363 : vector<16x1xf32>
    %cst_107 = arith.constant 1.000000e-07 : f32
    %365 = vector.broadcast %cst_107 : f32 to vector<16x1xf32>
    %366 = arith.addf %364, %365 : vector<16x1xf32>
    %367 = arith.subf %366, %356 : vector<16x1xf32>
    %368 = arith.divf %367, %366 : vector<16x1xf32>
    %369 = arith.subf %357, %368 : vector<16x1xf32>
    %cst_108 = arith.constant 1.000000e+00 : f32
    %370 = vector.broadcast %cst_108 : f32 to vector<16x1xf32>
    %371 = arith.subf %370, %369 : vector<16x1xf32>
    %372 = vector.extract_strided_slice %127 {offsets = [0, 0], sizes = [16, 1], strides = [1, 1]} : vector<16x4xf32> to vector<16x1xf32>
    %373 = arith.mulf %371, %372 : vector<16x1xf32>
    %374 = vector.shape_cast %373 : vector<16x1xf32> to vector<1x16x1xf32>
    %cst_109 = arith.constant dense<0.000000e+00> : vector<1xf32>
    %375 = vector.multi_reduction <add>, %374, %cst_109 [1, 2] : vector<1x16x1xf32> to vector<1xf32>
    %376 = vector.shape_cast %375 : vector<1xf32> to vector<1x1x1xf32>
    %377 = vector.extract %376[0, 0, 0] : f32 from vector<1x1x1xf32>
    %cst_110 = arith.constant 2.000000e+00 : f32
    %378 = arith.mulf %cst_110, %377 : f32
    %cst_111 = arith.constant 2.000000e-01 : f32
    %379 = arith.mulf %378, %cst_111 : f32
    %c1_112 = arith.constant 1 : index
    %c2_113 = arith.constant 2 : index
    %380 = memref.load %arg7[%c1_112, %c2_113] : memref<3x3xf32, #tpu.memory_space<smem>>
    memref.store %379, %arg7[%c1_112, %c2_113] : memref<3x3xf32, #tpu.memory_space<smem>>
    %c2_114 = arith.constant 2 : index
    %c0_115 = arith.constant 0 : index
    %c0_116 = arith.constant 0 : index
    %381 = vector.load %arg4[%c2_114, %c0_115, %c0_116] : memref<3x16x16xf32, #tpu.memory_space<vmem>>, vector<1x16x16xf32>
    %382 = vector.shape_cast %381 : vector<1x16x16xf32> to vector<16x16xf32>
    %cst_117 = arith.constant 0.000000e+00 : f32
    %383 = vector.broadcast %cst_117 : f32 to vector<16x16xf32>
    %384 = arith.maximumf %382, %383 : vector<16x16xf32>
    %385 = math.absf %382 : vector<16x16xf32>
    %cst_118 = arith.constant 0.000000e+00 : f32
    %386 = vector.broadcast %cst_118 : f32 to vector<16x16xf32>
    %387 = arith.subf %386, %385 : vector<16x16xf32>
    %388 = math.exp %387 : vector<16x16xf32>
    %389 = math.log1p %388 : vector<16x16xf32>
    %390 = arith.addf %384, %389 : vector<16x16xf32>
    %391 = arith.mulf %382, %130 : vector<16x16xf32>
    %392 = arith.subf %390, %391 : vector<16x16xf32>
    %393 = arith.subf %382, %390 : vector<16x16xf32>
    %394 = math.exp %393 : vector<16x16xf32>
    %395 = arith.mulf %130, %394 : vector<16x16xf32>
    %cst_119 = arith.constant 1.000000e+00 : f32
    %396 = vector.broadcast %cst_119 : f32 to vector<16x16xf32>
    %397 = arith.subf %396, %130 : vector<16x16xf32>
    %cst_120 = arith.constant 1.000000e+00 : f32
    %398 = vector.broadcast %cst_120 : f32 to vector<16x16xf32>
    %399 = arith.subf %398, %394 : vector<16x16xf32>
    %400 = arith.mulf %397, %399 : vector<16x16xf32>
    %401 = arith.addf %395, %400 : vector<16x16xf32>
    %cst_121 = arith.constant 1.000000e+00 : f32
    %402 = vector.broadcast %cst_121 : f32 to vector<16x16xf32>
    %403 = arith.subf %402, %401 : vector<16x16xf32>
    %404 = math.sqrt %403 : vector<16x16xf32>
    %405 = arith.mulf %403, %404 : vector<16x16xf32>
    %cst_122 = arith.constant 2.500000e-01 : f32
    %406 = vector.broadcast %cst_122 : f32 to vector<16x16xf32>
    %407 = arith.mulf %130, %406 : vector<16x16xf32>
    %cst_123 = arith.constant 1.000000e+00 : f32
    %408 = vector.broadcast %cst_123 : f32 to vector<16x16xf32>
    %409 = arith.subf %408, %130 : vector<16x16xf32>
    %cst_124 = arith.constant 7.500000e-01 : f32
    %410 = vector.broadcast %cst_124 : f32 to vector<16x16xf32>
    %411 = arith.mulf %409, %410 : vector<16x16xf32>
    %412 = arith.addf %407, %411 : vector<16x16xf32>
    %413 = arith.mulf %392, %405 : vector<16x16xf32>
    %414 = arith.mulf %413, %412 : vector<16x16xf32>
    %415 = vector.shape_cast %414 : vector<16x16xf32> to vector<1x16x16xf32>
    %cst_125 = arith.constant dense<0.000000e+00> : vector<1xf32>
    %416 = vector.multi_reduction <add>, %415, %cst_125 [1, 2] : vector<1x16x16xf32> to vector<1xf32>
    %417 = vector.shape_cast %416 : vector<1xf32> to vector<1x1x1xf32>
    %418 = vector.extract %417[0, 0, 0] : f32 from vector<1x1x1xf32>
    %cst_126 = arith.constant 2.000000e-01 : f32
    %419 = arith.mulf %418, %cst_126 : f32
    %c2_127 = arith.constant 2 : index
    %c0_128 = arith.constant 0 : index
    %420 = memref.load %arg7[%c2_127, %c0_128] : memref<3x3xf32, #tpu.memory_space<smem>>
    memref.store %419, %arg7[%c2_127, %c0_128] : memref<3x3xf32, #tpu.memory_space<smem>>
    %c2_129 = arith.constant 2 : index
    %c0_130 = arith.constant 0 : index
    %c0_131 = arith.constant 0 : index
    %421 = vector.load %arg5[%c2_129, %c0_130, %c0_131] : memref<3x16x4xf32, #tpu.memory_space<vmem>>, vector<1x16x4xf32>
    %422 = vector.shape_cast %421 : vector<1x16x4xf32> to vector<16x4xf32>
    %423 = arith.subf %422, %125 : vector<16x4xf32>
    %424 = math.absf %423 : vector<16x4xf32>
    %425 = arith.mulf %424, %127 : vector<16x4xf32>
    %426 = vector.shape_cast %425 : vector<16x4xf32> to vector<1x16x4xf32>
    %cst_132 = arith.constant dense<0.000000e+00> : vector<1xf32>
    %427 = vector.multi_reduction <add>, %426, %cst_132 [1, 2] : vector<1x16x4xf32> to vector<1xf32>
    %428 = vector.shape_cast %427 : vector<1xf32> to vector<1x1x1xf32>
    %429 = vector.extract %428[0, 0, 0] : f32 from vector<1x1x1xf32>
    %cst_133 = arith.constant 5.000000e+00 : f32
    %430 = arith.mulf %cst_133, %429 : f32
    %cst_134 = arith.constant 2.000000e-01 : f32
    %431 = arith.mulf %430, %cst_134 : f32
    %c2_135 = arith.constant 2 : index
    %c1_136 = arith.constant 1 : index
    %432 = memref.load %arg7[%c2_135, %c1_136] : memref<3x3xf32, #tpu.memory_space<smem>>
    memref.store %431, %arg7[%c2_135, %c1_136] : memref<3x3xf32, #tpu.memory_space<smem>>
    %433 = vector.extract_strided_slice %422 {offsets = [0, 0], sizes = [16, 1], strides = [1, 1]} : vector<16x4xf32> to vector<16x1xf32>
    %434 = vector.extract_strided_slice %422 {offsets = [0, 1], sizes = [16, 1], strides = [1, 1]} : vector<16x4xf32> to vector<16x1xf32>
    %435 = vector.extract_strided_slice %422 {offsets = [0, 2], sizes = [16, 1], strides = [1, 1]} : vector<16x4xf32> to vector<16x1xf32>
    %436 = vector.extract_strided_slice %422 {offsets = [0, 3], sizes = [16, 1], strides = [1, 1]} : vector<16x4xf32> to vector<16x1xf32>
    %437 = vector.extract_strided_slice %125 {offsets = [0, 0], sizes = [16, 1], strides = [1, 1]} : vector<16x4xf32> to vector<16x1xf32>
    %438 = vector.extract_strided_slice %125 {offsets = [0, 1], sizes = [16, 1], strides = [1, 1]} : vector<16x4xf32> to vector<16x1xf32>
    %439 = vector.extract_strided_slice %125 {offsets = [0, 2], sizes = [16, 1], strides = [1, 1]} : vector<16x4xf32> to vector<16x1xf32>
    %440 = vector.extract_strided_slice %125 {offsets = [0, 3], sizes = [16, 1], strides = [1, 1]} : vector<16x4xf32> to vector<16x1xf32>
    %cst_137 = arith.constant 5.000000e-01 : f32
    %441 = vector.broadcast %cst_137 : f32 to vector<16x1xf32>
    %442 = arith.mulf %435, %441 : vector<16x1xf32>
    %443 = arith.subf %433, %442 : vector<16x1xf32>
    %cst_138 = arith.constant 5.000000e-01 : f32
    %444 = vector.broadcast %cst_138 : f32 to vector<16x1xf32>
    %445 = arith.mulf %435, %444 : vector<16x1xf32>
    %446 = arith.addf %433, %445 : vector<16x1xf32>
    %cst_139 = arith.constant 5.000000e-01 : f32
    %447 = vector.broadcast %cst_139 : f32 to vector<16x1xf32>
    %448 = arith.mulf %436, %447 : vector<16x1xf32>
    %449 = arith.subf %434, %448 : vector<16x1xf32>
    %cst_140 = arith.constant 5.000000e-01 : f32
    %450 = vector.broadcast %cst_140 : f32 to vector<16x1xf32>
    %451 = arith.mulf %436, %450 : vector<16x1xf32>
    %452 = arith.addf %434, %451 : vector<16x1xf32>
    %cst_141 = arith.constant 5.000000e-01 : f32
    %453 = vector.broadcast %cst_141 : f32 to vector<16x1xf32>
    %454 = arith.mulf %439, %453 : vector<16x1xf32>
    %455 = arith.subf %437, %454 : vector<16x1xf32>
    %cst_142 = arith.constant 5.000000e-01 : f32
    %456 = vector.broadcast %cst_142 : f32 to vector<16x1xf32>
    %457 = arith.mulf %439, %456 : vector<16x1xf32>
    %458 = arith.addf %437, %457 : vector<16x1xf32>
    %cst_143 = arith.constant 5.000000e-01 : f32
    %459 = vector.broadcast %cst_143 : f32 to vector<16x1xf32>
    %460 = arith.mulf %440, %459 : vector<16x1xf32>
    %461 = arith.subf %438, %460 : vector<16x1xf32>
    %cst_144 = arith.constant 5.000000e-01 : f32
    %462 = vector.broadcast %cst_144 : f32 to vector<16x1xf32>
    %463 = arith.mulf %440, %462 : vector<16x1xf32>
    %464 = arith.addf %438, %463 : vector<16x1xf32>
    %465 = arith.minimumf %446, %458 : vector<16x1xf32>
    %466 = arith.maximumf %443, %455 : vector<16x1xf32>
    %467 = arith.subf %465, %466 : vector<16x1xf32>
    %cst_145 = arith.constant 0.000000e+00 : f32
    %468 = vector.broadcast %cst_145 : f32 to vector<16x1xf32>
    %469 = arith.maximumf %467, %468 : vector<16x1xf32>
    %470 = arith.minimumf %452, %464 : vector<16x1xf32>
    %471 = arith.maximumf %449, %461 : vector<16x1xf32>
    %472 = arith.subf %470, %471 : vector<16x1xf32>
    %cst_146 = arith.constant 0.000000e+00 : f32
    %473 = vector.broadcast %cst_146 : f32 to vector<16x1xf32>
    %474 = arith.maximumf %472, %473 : vector<16x1xf32>
    %475 = arith.mulf %469, %474 : vector<16x1xf32>
    %476 = arith.mulf %435, %436 : vector<16x1xf32>
    %477 = arith.mulf %439, %440 : vector<16x1xf32>
    %478 = arith.addf %476, %477 : vector<16x1xf32>
    %479 = arith.subf %478, %475 : vector<16x1xf32>
    %cst_147 = arith.constant 1.000000e-07 : f32
    %480 = vector.broadcast %cst_147 : f32 to vector<16x1xf32>
    %481 = arith.addf %479, %480 : vector<16x1xf32>
    %482 = arith.divf %475, %481 : vector<16x1xf32>
    %483 = arith.maximumf %446, %458 : vector<16x1xf32>
    %484 = arith.minimumf %443, %455 : vector<16x1xf32>
    %485 = arith.subf %483, %484 : vector<16x1xf32>
    %486 = arith.maximumf %452, %464 : vector<16x1xf32>
    %487 = arith.minimumf %449, %461 : vector<16x1xf32>
    %488 = arith.subf %486, %487 : vector<16x1xf32>
    %489 = arith.mulf %485, %488 : vector<16x1xf32>
    %cst_148 = arith.constant 1.000000e-07 : f32
    %490 = vector.broadcast %cst_148 : f32 to vector<16x1xf32>
    %491 = arith.addf %489, %490 : vector<16x1xf32>
    %492 = arith.subf %491, %481 : vector<16x1xf32>
    %493 = arith.divf %492, %491 : vector<16x1xf32>
    %494 = arith.subf %482, %493 : vector<16x1xf32>
    %cst_149 = arith.constant 1.000000e+00 : f32
    %495 = vector.broadcast %cst_149 : f32 to vector<16x1xf32>
    %496 = arith.subf %495, %494 : vector<16x1xf32>
    %497 = vector.extract_strided_slice %127 {offsets = [0, 0], sizes = [16, 1], strides = [1, 1]} : vector<16x4xf32> to vector<16x1xf32>
    %498 = arith.mulf %496, %497 : vector<16x1xf32>
    %499 = vector.shape_cast %498 : vector<16x1xf32> to vector<1x16x1xf32>
    %cst_150 = arith.constant dense<0.000000e+00> : vector<1xf32>
    %500 = vector.multi_reduction <add>, %499, %cst_150 [1, 2] : vector<1x16x1xf32> to vector<1xf32>
    %501 = vector.shape_cast %500 : vector<1xf32> to vector<1x1x1xf32>
    %502 = vector.extract %501[0, 0, 0] : f32 from vector<1x1x1xf32>
    %cst_151 = arith.constant 2.000000e+00 : f32
    %503 = arith.mulf %cst_151, %502 : f32
    %cst_152 = arith.constant 2.000000e-01 : f32
    %504 = arith.mulf %503, %cst_152 : f32
    %c2_153 = arith.constant 2 : index
    %c2_154 = arith.constant 2 : index
    %505 = memref.load %arg7[%c2_153, %c2_154] : memref<3x3xf32, #tpu.memory_space<smem>>
    memref.store %504, %arg7[%c2_153, %c2_154] : memref<3x3xf32, #tpu.memory_space<smem>>
    return
  }
}

</mosaic_0001>

<bundles_post_ra>
// kernel: tpu_custom_call.1
= control target key start
LH: loop header
LB: loop body
LE: loop exit
PB: predicated region body
PF: predicated region fallthrough
CT: control target
= control target key end

     0   :  { %12 = vsyncpa [#allocation4], 0  ;;  %s2389_s0 = inlined_call_operand.vmem [shape: s32[5], index: 0, kind: input, shape index: {}]   ;;  %s2390_s1 = inlined_call_operand.vmem [shape: s32[5], index: 1, kind: input, shape index: {}]   ;;  %s2391_s2 = inlined_call_operand.vmem [shape: s32[5], index: 2, kind: input, shape index: {}]   ;;  %s2392_s3 = inlined_call_operand.vmem [shape: s32[5], index: 3, kind: input, shape index: {}]   ;;  %s2393_s4 = inlined_call_operand.vmem [shape: f32[3,16,16], index: 4, kind: input, shape index: {}]   ;;  %s2394_s5 = inlined_call_operand.vmem [shape: f32[3,16,4], index: 5, kind: input, shape index: {}]   ;;  %s2395_s6 = inlined_call_operand.vmem [shape: f32[5,4], index: 6, kind: input, shape index: {}]   ;;  %s2396_s7 = inlined_call_operand.hbm [shape: f32[3,3], index: 7, kind: output, shape index: {}]  }
   0x1   :  { %13 = vsyncpa [#allocation6], 0 }
   0x2   :  { %14 = vsyncpa [#allocation9], 0  ;;  %s30_s26 = sshll.u32 %s2390_s1, 4  ;;  %s31_s26 = int_to_ptr.vmem [resolvable:$true] %s30_s26 }
   0x3   :  { %15 = vsyncpa [#allocation3], 0  ;;  %s21_s29 = sshll.u32 %s2389_s0, 4  ;;  %s1336_s30 = smov [#allocation5]   ;;  %s22_s29 = int_to_ptr.vmem [resolvable:$true] %s21_s29 }
   0x4   :  { %33 = dma.vmem_to_smem %s31_s26, 16, %s1336_s30, [#allocation6]  }
   0x5   :  { %s1337_s8 = smov [#allocation2]   ;;  %s39_s11 = sshll.u32 %s2391_s2, 4  ;;  %s40_s11 = int_to_ptr.vmem [resolvable:$true] %s39_s11 }
   0x6   :  { %24 = dma.vmem_to_smem %s22_s29, 16, %s1337_s8, [#allocation4]  }
   0x7   :  { %s48_s1 = sshll.u32 %s2392_s3, 4  ;;  %s1338_s14 = smov [#allocation7]   ;;  %s49_s1 = int_to_ptr.vmem [resolvable:$true] %s48_s1 }
   0x8   :  { %42 = dma.vmem_to_smem %s40_s11, 16, %s1338_s14, [#allocation6]  }
   0x9   :  { %s1339_s15 = smov [#allocation8]  }
   0xa   :  { %51 = dma.vmem_to_smem %s49_s1, 16, %s1339_s15, [#allocation9]  }
   0xb   :  { %1328 = dma.done.wait [#allocation4], 16  }
   0xc   :  { %1329 = vsyncadd [#allocation4], 4294967280 }
   0xd   :  { %1330 = dma.done.wait [#allocation6], 32  }
   0xe   :  { %1331 = vsyncadd [#allocation6], 4294967264 }
   0xf   :  { %1332 = dma.done.wait [#allocation9], 16  }
  0x10   :  { %1333 = vsyncadd [#allocation9], 4294967280 }
  0x11   :  { %74 = sfence }
  0x12   :  { %v1400_v0 = vld [vmem:[%s2394_s5] sm:$0xff]  ;;  %s81_s2 = sld [smem:[#allocation2]]  ;;  %v75_v2 = vlaneseq  ;;  %s1340_s17 = smov 126   ;;  %v1407_v3 = vld [vmem:[%s2394_s5 + $0x8] sm:$0xff]  ;;  %vm96_vm0 = vcmask 28672  }
  0x13   :  { %v349_v1 = vmul.f32 0.5, %v1400_v0  ;;  %s83_s3 = sld [smem:[#allocation5]]  ;;  %v350_v5 = vmul.f32 0.5, %v1407_v3  ;;  %v1418_v6 = vld [vmem:[%s2395_s6] sm:$0x1f] }
  0x14   :  { %s85_s18 = sld [smem:[#allocation7]]  ;;  %v1410_v4 = vshrl.u32 %v75_v2, 7  ;;  %v1431_v8 = vld [vmem:[%s2394_s5 + $0x20] sm:$0xff] }
  0x15   :  { %353 = vrot.lane.b32.xlu0 %v349_v1, %s1340_s17  ;;  %s1137_s21 = sld [smem:[#allocation2 + $0x1]]  ;;  %v952_v16 = vmul.f32 0.5, %v1431_v8 }
  0x16   :  { %s1139_s22 = sld [smem:[#allocation5 + $0x1]]  ;;  %v1444_v14 = vadd.s32 8, %v1410_v4 }
  0x17   :  { %s1140_s24 = sld [smem:[#allocation7 + $0x1]] }
  0x18   :  { %s1136_s23 = sshll.u32 %s81_s2, 3  ;;  %s1413_s25 = sld [smem:[#allocation2 + $0x2]] }
  0x19   :  { %s1420_s28 = sadd.s32 %s1136_s23, %s83_s3  ;;  %s1143_s29 = sld [smem:[#allocation5 + $0x2]] }
  0x1a   :  { %s1422_s30 = sld [smem:[#allocation8 + %s85_s18]]  ;;  %v93_v7 = vstv %s85_s18  ;;  %v87_v9 = vstv %s1420_s28 }
  0x1b   :  { %vm94_vm1 = vcmp.eq.s32.totalorder %v1410_v4, %v93_v7  ;;  %s1138_s8 = sshll.u32 %s1137_s21, 3  ;;  %s1425_s9 = sld [smem:[#allocation7 + $0x2]]  ;;  %vm1452_vm3 = vcmp.eq.s32.totalorder %v1410_v4, %v87_v9  ;;  %vm1475_vm5 = vcmp.eq.s32.totalorder %v1444_v14, %v87_v9 }
  0x1c   :  { %v95_v10 = vsel %vm94_vm1, %v1418_v6, 0.0  ;;  %s1435_s6 = sadd.s32 %s1139_s22, %s1138_s8  ;;  %s1437_s12 = sld [smem:[#allocation2 + $0x3]] }
  0x1d   :  { %355 = vrot.lane.b32.xlu0 %v350_v5, %s1340_s17  ;;  %v97_v11 = vsel %vm96_vm0, %v95_v10, 0.0  ;;  %s1440_s13 = sld [smem:[#allocation8 + %s1140_s24]]  ;;  %v114_v12 = vstv %s1435_s6  ;;  %v120_v13 = vstv %s1140_s24  ;;  %v1541_v5 = vand.u32 127, %v75_v2  ;;  %v1555_v2 = vld [vmem:[%s2394_s5 + $0x10] sm:$0xff]  ;;  %s1341_s8 = smov 127  }
  0x1e   :  { %v98_v15 = vrot.slane %v97_v11, 4  ;;  %vm121_vm2 = vcmp.eq.s32.totalorder %v1410_v4, %v120_v13  ;;  %s1142_s1 = sshll.u32 %s1413_s25, 3  ;;  %s1448_s14 = sld [smem:[#allocation5 + $0x3]]  ;;  %vm1463_vm4 = vcmp.eq.s32.totalorder %v1410_v4, %v114_v12  ;;  %vm1491_vm7 = vcmp.eq.s32.totalorder %v1444_v14, %v114_v12 }
  0x1f   :  { %v122_v18 = vsel %vm121_vm2, %v1418_v6, 0.0  ;;  %s1457_s15 = sadd.s32 %s1143_s29, %s1142_s1  ;;  %s1459_s0 = sld [smem:[#allocation7 + $0x3]]  ;;  %v2424_v13 = vmov 0 }
  0x20   :  { %v90_v19 = vstv %s1422_s30  ;;  %v99_v20 = vadd.f32 %v98_v15, %v97_v11  ;;  %v123_v22 = vsel %vm96_vm0, %v122_v18, 0.0  ;;  %s1468_s16 = sld [smem:[#allocation2 + $0x4]]  ;;  %v140_v28 = vstv %s1457_s15  ;;  %s1344_s25 = smov [#allocation10]  }
  0x21   :  { %v124_v23 = vrot.slane %v123_v22, 4  ;;  %s1471_s2 = sld [smem:[#allocation8 + %s1425_s9]]  ;;  %v146_v24 = vstv %s1425_s9  ;;  %v91_v26 = vsel %vm1452_vm3, %v90_v19, 16  ;;  %v92_v29 = vsel %vm1475_vm5, %v90_v19, 16  ;;  %s1342_s9 = smov 2  }
  0x22   :  { %v100_v27 = vrot.slane %v99_v20, 2  ;;  %vm147_vm6 = vcmp.eq.s32.totalorder %v1410_v4, %v146_v24  ;;  %s1146_s3 = sshll.u32 %s1437_s12, 3  ;;  %s1151_s18 = sld [smem:[#allocation5 + $0x4]]  ;;  %vm1503_vm8 = vcmp.eq.s32.totalorder %v1410_v4, %v140_v28  ;;  %vm1512_vm10 = vcmp.eq.s32.totalorder %v1444_v14, %v140_v28 }
  0x23   :  { %v117_v30 = vstv %s1440_s13  ;;  %v125_v31 = vadd.f32 %v124_v23, %v123_v22  ;;  %v148_v32 = vsel %vm147_vm6, %v1418_v6, 0.0  ;;  %s1488_s19 = sld [smem:[#allocation7 + $0x4]]  ;;  %v663_v22 = vmul.f32 0.5, %v1555_v2 }
  0x24   :  { %v101_v34 = vadd.f32 %v100_v27, %v99_v20  ;;  %v149_v35 = vsel %vm96_vm0, %v148_v32, 0.0  ;;  %s163_s20 = sadd.s32 %s1448_s14, %s1146_s3  ;;  %v118_v36 = vsel %vm1463_vm4, %v117_v30, %v91_v26  ;;  %v119_v37 = vsel %vm1491_vm7, %v117_v30, %v92_v29  ;;  %v1583_v29 = vld [vmem:[%s2394_s5 + $0x18] sm:$0xff]  ;;  %s1123_s3 = sshll.u32 %s2396_s7, 4  ;;  %s1124_s3 = int_to_ptr.hbm [resolvable:$true] %s1123_s3 }
  0x25   :  { %956 = vrot.lane.b32.xlu0 %v952_v16, %s1340_s17  ;;  %v126_v38 = vrot.slane %v125_v31, 2  ;;  %v150_v40 = vrot.slane %v149_v35, 4  ;;  %s165_s21 = sld [smem:[#allocation8 + %s1459_s0]]  ;;  %v172_v41 = vstv %s1459_s0  ;;  %v166_v43 = vstv %s163_s20  ;;  %667 = vrot.lane.b32.xlu2 %v663_v22, %s1340_s17 }
  0x26   :  { %v102_v42 = vrot.slane %v101_v34, 1  ;;  %vm173_vm9 = vcmp.eq.s32.totalorder %v1410_v4, %v172_v41  ;;  %s1150_s22 = sshll.u32 %s1468_s16, 3  ;;  %vm1524_vm11 = vcmp.eq.s32.totalorder %v1410_v4, %v166_v43  ;;  %vm1531_vm12 = vcmp.eq.s32.totalorder %v1444_v14, %v166_v43 }
  0x27   :  { %v127_v45 = vadd.f32 %v126_v38, %v125_v31  ;;  %v143_v46 = vstv %s1471_s2  ;;  %v151_v47 = vadd.f32 %v150_v40, %v149_v35  ;;  %v174_v48 = vsel %vm173_vm9, %v1418_v6, 0.0 }
  0x28   :  { %v175_v49 = vsel %vm96_vm0, %v174_v48, 0.0  ;;  %s189_s23 = sadd.s32 %s1151_s18, %s1150_s22  ;;  %v144_v50 = vsel %vm1503_vm8, %v143_v46, %v118_v36  ;;  %v145_v51 = vsel %vm1512_vm10, %v143_v46, %v119_v37  ;;  %v103_v55 = vadd.f32 %v102_v42, %v101_v34 }
  0x29   :  { %v152_v52 = vrot.slane %v151_v47, 2  ;;  %v176_v54 = vrot.slane %v175_v49, 4  ;;  %s191_s24 = sld [smem:[#allocation8 + %s1488_s19]]  ;;  %v128_v56 = vrot.slane %v127_v45, 1  ;;  %v198_v57 = vstv %s1488_s19 }
  0x2a   :  { %v192_v62 = vstv %s189_s23  ;;  %vm199_vm13 = vcmp.eq.s32.totalorder %v1410_v4, %v198_v57  ;;  %v104_v11 = vsel %vm1452_vm3, %v103_v55, 0.0  ;;  %v105_v28 = vsel %vm1475_vm5, %v103_v55, 0.0 }
  0x2b   :  { %v153_v59 = vadd.f32 %v152_v52, %v151_v47  ;;  %v169_v60 = vstv %s165_s21  ;;  %v177_v61 = vadd.f32 %v176_v54, %v175_v49  ;;  %v200_v10 = vsel %vm199_vm13, %v1418_v6, 0.0  ;;  %v1612_v47 = vld [vmem:[%s2394_s5 + $0x28] sm:$0xff] }
  0x2c   :  { %v170_v63 = vsel %vm1524_vm11, %v169_v60, %v144_v50  ;;  %v171_v1 = vsel %vm1531_vm12, %v169_v60, %v145_v51  ;;  %v129_v12 = vadd.f32 %v128_v56, %v127_v45  ;;  %vm1547_vm14 = vcmp.eq.s32.totalorder %v1410_v4, %v192_v62 }
  0x2d   :  { %v154_v7 = vrot.slane %v153_v59, 1  ;;  %v178_v9 = vrot.slane %v177_v61, 2  ;;  %v2425_v13 = vsel %vm1547_vm14, 4294967295, %v2424_v13  ;;  %v201_v15 = vsel %vm96_vm0, %v200_v10, 0.0 }
  0x2e   :  { %v202_v19 = vrot.slane %v201_v15, 4  ;;  %vm1558_vm15 = vcmp.eq.s32.totalorder %v1444_v14, %v192_v62  ;;  %v130_v14 = vsel %vm1463_vm4, %v129_v12, %v104_v11  ;;  %v131_v34 = vsel %vm1491_vm7, %v129_v12, %v105_v28 }
  0x2f   :  { %v179_v16 = vadd.f32 %v178_v9, %v177_v61  ;;  %v195_v18 = vstv %s191_s24  ;;  %v155_v23 = vadd.f32 %v154_v7, %v153_v59  ;;  %v664_v35 = vmul.f32 0.5, %v1583_v29 }
  0x30   :  { %v1564_v4 = vsel %vm1547_vm14, %v195_v18, %v170_v63  ;;  %v1568_v20 = vsel %vm1558_vm15, %v195_v18, %v171_v1  ;;  %v203_v26 = vadd.f32 %v202_v19, %v201_v15  ;;  %v953_v48 = vmul.f32 0.5, %v1612_v47 }
  0x31   :  { %v180_v24 = vrot.slane %v179_v16, 1  ;;  %vm212_vm0 = vcmp.eq.s32.totalorder %v1541_v5, %v1564_v4  ;;  %vm213_vm1 = vcmp.eq.s32.totalorder %v1541_v5, %v1568_v20  ;;  %v156_v31 = vsel %vm1503_vm8, %v155_v23, %v130_v14  ;;  %669 = vrot.lane.b32.xlu2 %v664_v35, %s1340_s17 }
  0x32   :  { %v204_v27 = vrot.slane %v203_v26, 2  ;;  %v157_v40 = vsel %vm1512_vm10, %v155_v23, %v131_v34 }
  0x33   :  { %v181_v30 = vadd.f32 %v180_v24, %v179_v16 }
  0x34   :  { %v205_v32 = vadd.f32 %v204_v27, %v203_v26 }
  0x35   :  { %v182_v37 = vsel %vm1524_vm11, %v181_v30, %v156_v31  ;;  %v183_v43 = vsel %vm1531_vm12, %v181_v30, %v157_v40 }
  0x36   :  { %v206_v36 = vrot.slane %v205_v32, 1 }
  0x38   :  { %v207_v38 = vadd.f32 %v206_v36, %v205_v32 }
  0x3a   :  { %v1597_v41 = vsel %vm1547_vm14, %v207_v38, %v182_v37  ;;  %v1605_v45 = vsel %vm1558_vm15, %v207_v38, %v183_v43 }
  0x3b   :  { %v363_v42 = vmul.f32 0.5, %v1597_v41  ;;  %v364_v46 = vmul.f32 0.5, %v1605_v45 }
  0x3d   :  { %367 = vrot.lane.b32.xlu1 %v363_v42, %s1340_s17 }
  0x45   :  { %369 = vrot.lane.b32.xlu1 %v364_v46, %s1340_s17 }
  0x4d   :  { %958 = vrot.lane.b32.xlu1 %v953_v48, %s1340_s17 }
  0x7f   :  { %v668_v51 = vpop.permute.xlu2 %667 }
  0x80   :  { %v673_v55 = vsub.f32 %v1555_v2, %v668_v51  ;;  %v675_v56 = vadd.f32 %v1555_v2, %v668_v51 }
  0x87   :  { %v354_v49 = vpop.permute.xlu0 %353 }
  0x88   :  { %v359_v52 = vsub.f32 %v1400_v0, %v354_v49  ;;  %v361_v54 = vadd.f32 %v354_v49, %v1400_v0 }
  0x8b   :  { %v670_v1 = vpop.permute.xlu2 %669 }
  0x8c   :  { %v674_v26 = vsub.f32 %v1583_v29, %v670_v1  ;;  %v676_v30 = vadd.f32 %v1583_v29, %v670_v1 }
  0x8f   :  { %v356_v50 = vpop.permute.xlu0 %355 }
  0x90   :  { %v360_v12 = vsub.f32 %v1407_v3, %v356_v50  ;;  %v362_v15 = vadd.f32 %v356_v50, %v1407_v3 }
  0x97   :  { %v957_v57 = vpop.permute.xlu0 %956 }
  0x98   :  { %v962_v62 = vsub.f32 %v1431_v8, %v957_v57  ;;  %v964_v63 = vadd.f32 %v1431_v8, %v957_v57 }
  0xaf   :  { %v368_v59 = vpop.permute.xlu1 %367 }
  0xb0   :  { %v373_v60 = vsub.f32 %v1597_v41, %v368_v59  ;;  %v375_v61 = vadd.f32 %v368_v59, %v1597_v41 }
  0xb2   :  { %v377_v7 = vmin.f32 %v361_v54, %v375_v61  ;;  %v379_v9 = vmax.f32 %v359_v52, %v373_v60  ;;  %v677_v10 = vmin.f32 %v675_v56, %v375_v61  ;;  %v679_v11 = vmax.f32 %v673_v55, %v373_v60 }
  0xb3   :  { %v467_v16 = vmax.f32 %v361_v54, %v375_v61  ;;  %v469_v18 = vmin.f32 %v359_v52, %v373_v60  ;;  %v757_v23 = vmax.f32 %v675_v56, %v375_v61  ;;  %v759_v24 = vmin.f32 %v673_v55, %v373_v60 }
  0xb4   :  { %v381_v19 = vsub.f32 %v377_v7, %v379_v9  ;;  %v1626_v22 = vsub.f32 %v677_v10, %v679_v11  ;;  %v1046_v27 = vmax.f32 %v964_v63, %v375_v61  ;;  %v1048_v28 = vmin.f32 %v962_v62, %v373_v60 }
  0xb5   :  { %v1629_v14 = vsub.f32 %v467_v16, %v469_v18  ;;  %v1633_v34 = vsub.f32 %v757_v23, %v759_v24  ;;  %v966_v55 = vmin.f32 %v964_v63, %v375_v61  ;;  %v968_v56 = vmax.f32 %v962_v62, %v373_v60 }
  0xb6   :  { %v383_v31 = vmax.f32 %v381_v19, 0.0  ;;  %v683_v32 = vmax.f32 %v1626_v22, 0.0  ;;  %v1635_v36 = vsub.f32 %v1046_v27, %v1048_v28 }
  0xb7   :  { %v370_v35 = vpop.permute.xlu1 %369 }
  0xb8   :  { %v374_v37 = vsub.f32 %v1605_v45, %v370_v35  ;;  %v376_v38 = vadd.f32 %v370_v35, %v1605_v45  ;;  %387 = vrot.lane.b32.xlu2 %v383_v31, %s1341_s8  ;;  %687 = vrot.lane.b32.xlu1 %v683_v32, %s1341_s8 }
  0xba   :  { %v678_v40 = vmin.f32 %v676_v30, %v376_v38  ;;  %v680_v42 = vmax.f32 %v674_v26, %v374_v37  ;;  %v378_v43 = vmin.f32 %v362_v15, %v376_v38  ;;  %v380_v46 = vmax.f32 %v360_v12, %v374_v37 }
  0xbb   :  { %v758_v48 = vmax.f32 %v676_v30, %v376_v38  ;;  %v760_v49 = vmin.f32 %v674_v26, %v374_v37  ;;  %v468_v50 = vmax.f32 %v362_v15, %v376_v38  ;;  %v470_v51 = vmin.f32 %v360_v12, %v374_v37 }
  0xbc   :  { %v682_v52 = vsub.f32 %v678_v40, %v680_v42  ;;  %v382_v54 = vsub.f32 %v378_v43, %v380_v46  ;;  %v970_v12 = vsub.f32 %v966_v55, %v968_v56 }
  0xbd   :  { %v1641_v57 = vsub.f32 %v758_v48, %v760_v49  ;;  %v1643_v59 = vsub.f32 %v468_v50, %v470_v51 }
  0xbe   :  { %v684_v1 = vmax.f32 %v682_v52, 0.0  ;;  %v384_v7 = vmax.f32 %v382_v54, 0.0  ;;  %v972_v18 = vmax.f32 %v970_v12, 0.0 }
  0xbf   :  { %v959_v9 = vpop.permute.xlu1 %958 }
  0xc0   :  { %v963_v10 = vsub.f32 %v1612_v47, %v959_v9  ;;  %v965_v11 = vadd.f32 %v1612_v47, %v959_v9  ;;  %689 = vrot.lane.b32.xlu2 %v684_v1, %s1341_s8  ;;  %389 = vrot.lane.b32.xlu0 %v384_v7, %s1341_s8 }
  0xc2   :  { %v967_v15 = vmin.f32 %v965_v11, %v376_v38  ;;  %v969_v16 = vmax.f32 %v963_v10, %v374_v37  ;;  %v1047_v61 = vmax.f32 %v965_v11, %v376_v38  ;;  %v1049_v60 = vmin.f32 %v963_v10, %v374_v37 }
  0xc4   :  { %v971_v62 = vsub.f32 %v967_v15, %v969_v16  ;;  %v1649_v63 = vsub.f32 %v1047_v61, %v1049_v60 }
  0xc6   :  { %v973_v19 = vmax.f32 %v971_v62, 0.0 }
  0xc8   :  { %976 = vrot.lane.b32.xlu0 %v972_v18, %s1341_s8  ;;  %978 = vrot.lane.b32.xlu1 %v973_v19, %s1341_s8 }
  0xc9   :  { %397 = vrot.lane.b32.xlu2 %v1400_v0, %s1341_s8 }
  0xd0   :  { %407 = vrot.lane.b32.xlu1 %v1597_v41, %s1341_s8  ;;  %399 = vrot.lane.b32.xlu0 %v1407_v3, %s1341_s8 }
  0xd1   :  { %409 = vrot.lane.b32.xlu2 %v1605_v45, %s1341_s8 }
  0xd8   :  { %699 = vrot.lane.b32.xlu1 %v1583_v29, %s1341_s8  ;;  %697 = vrot.lane.b32.xlu0 %v1555_v2, %s1341_s8 }
  0xd9   :  { %986 = vrot.lane.b32.xlu2 %v1431_v8, %s1341_s8 }
  0xe0   :  { %988 = vrot.lane.b32.xlu0 %v1612_v47, %s1341_s8 }
 0x112   :  { %v388_v22 = vpop.permute.xlu2 %387 }
 0x113   :  { %v1669_v23 = vmul.f32 %v388_v22, %v383_v31 }
 0x115   :  { %419 = vrot.lane.b32.xlu1 %v1669_v23, %s1342_s9 }
 0x11a   :  { %v690_v24 = vpop.permute.xlu2 %689 }
 0x11b   :  { %v1672_v26 = vmul.f32 %v690_v24, %v684_v1 }
 0x11d   :  { %2428 = vst [vmem:[#allocation15_spill] sm:$0xff] %v1672_v26  ;;  %711 = vrot.lane.b32.xlu1 %v1672_v26, %s1342_s9 }
 0x125   :  { %475 = vrot.lane.b32.xlu1 %v1629_v14, %s1341_s8 }
 0x12a   :  { %v688_v27 = vpop.permute.xlu1 %687 }
 0x12b   :  { %v1677_v28 = vmul.f32 %v688_v27, %v683_v32  ;;  %v398_v32 = vpop.permute.xlu2 %397 }
 0x12c   :  { %v403_v48 = vmul.f32 %v398_v32, %v1400_v0 }
 0x12d   :  { %2429 = vst [vmem:[#allocation16_spill] sm:$0xff] %v1677_v28  ;;  %767 = vrot.lane.b32.xlu1 %v1641_v57, %s1341_s8  ;;  %709 = vrot.lane.b32.xlu0 %v1677_v28, %s1342_s9 }
 0x132   :  { %v390_v30 = vpop.permute.xlu0 %389 }
 0x133   :  { %v1682_v31 = vmul.f32 %v390_v30, %v384_v7  ;;  %v410_v43 = vpop.permute.xlu2 %409 }
 0x134   :  { %v414_v55 = vmul.f32 %v410_v43, %v1605_v45 }
 0x135   :  { %421 = vrot.lane.b32.xlu2 %v1682_v31, %s1342_s9 }
 0x13a   :  { %v977_v35 = vpop.permute.xlu0 %976  ;;  %v979_v37 = vpop.permute.xlu1 %978 }
 0x13b   :  { %v1685_v38 = vmul.f32 %v977_v35, %v972_v18  ;;  %v1687_v40 = vmul.f32 %v979_v37, %v973_v19  ;;  %v987_v52 = vpop.permute.xlu2 %986 }
 0x13c   :  { %v992_v60 = vmul.f32 %v1431_v8, %v987_v52 }
 0x13d   :  { %2430 = vst [vmem:[#allocation17_spill] sm:$0xff] %v1685_v38  ;;  %998 = vrot.lane.b32.xlu2 %v1685_v38, %s1342_s9  ;;  %1000 = vrot.lane.b32.xlu0 %v1687_v40, %s1342_s9 }
 0x13e   :  { %2431 = vst [vmem:[#allocation18_spill] sm:$0xff] %v1687_v40 }
 0x142   :  { %v408_v42 = vpop.permute.xlu1 %407  ;;  %v400_v50 = vpop.permute.xlu0 %399 }
 0x143   :  { %v413_v49 = vmul.f32 %v408_v42, %v1597_v41  ;;  %v404_v1 = vmul.f32 %v400_v50, %v1407_v3 }
 0x145   :  { %477 = vrot.lane.b32.xlu2 %v1643_v59, %s1341_s8  ;;  %765 = vrot.lane.b32.xlu0 %v1633_v34, %s1341_s8  ;;  %v415_v51 = vadd.f32 %v413_v49, %v403_v48  ;;  %v416_v11 = vadd.f32 %v414_v55, %v404_v1  ;;  %v1715_v48 = vld [vmem:[%s2393_s4] sm:$0xff] }
 0x14a   :  { %v700_v46 = vpop.permute.xlu1 %699  ;;  %v698_v10 = vpop.permute.xlu0 %697 }
 0x14b   :  { %v704_v56 = vmul.f32 %v1583_v29, %v700_v46  ;;  %v994_v29 = vadd.f32 %v992_v60, %v413_v49  ;;  %v703_v24 = vmul.f32 %v1555_v2, %v698_v10  ;;  %v1720_v2 = vld [vmem:[%s2393_s4 + $0x8] sm:$0xff]  ;;  %v1733_v60 = vld [vmem:[%s2393_s4 + $0x10] sm:$0xff] }
 0x14c   :  { %v223_v52 = vand.u32 2147483647, %v1720_v2 }
 0x14d   :  { %1054 = vrot.lane.b32.xlu2 %v1635_v36, %s1341_s8  ;;  %1056 = vrot.lane.b32.xlu0 %v1649_v63, %s1341_s8  ;;  %v706_v12 = vadd.f32 %v704_v56, %v414_v55  ;;  %v705_v30 = vadd.f32 %v703_v24, %v413_v49 }
 0x152   :  { %v989_v3 = vpop.permute.xlu0 %988 }
 0x153   :  { %v993_v8 = vmul.f32 %v1612_v47, %v989_v3 }
 0x155   :  { %v995_v42 = vadd.f32 %v993_v8, %v414_v55 }
 0x187   :  { %v420_v54 = vpop.permute.xlu1 %419 }
 0x188   :  { %v425_v7 = vsub.f32 %v415_v51, %v420_v54  ;;  %v222_v51 = vand.u32 2147483647, %v1715_v48  ;;  %v225_v54 = vsub.f32 0.0, %v223_v52  ;;  %v221_v52 = vmax.f32 %v1720_v2, 0.0 }
 0x18a   :  { %v427_v9 = vadd.f32 1e-07, %v425_v7  ;;  %v224_v47 = vsub.f32 0.0, %v222_v51  ;;  %v228_v56 = vmul.f32 1.442695, %v225_v54  ;;  %v220_v51 = vmax.f32 %v1715_v48, 0.0 }
 0x18c   :  { %431 = vrot.lane.b32.xlu1 %v427_v9, %s1340_s17  ;;  %v226_v55 = vmul.f32 1.442695, %v224_v47 }
 0x18e   :  { %1190 = vpow2.f32 %v226_v55 }
 0x18f   :  { %v422_v0 = vpop.permute.xlu2 %421  ;;  %v712_v15 = vpop.permute.xlu1 %711  ;;  %1192 = vpow2.f32 %v228_v56 }
 0x190   :  { %v426_v16 = vsub.f32 %v416_v11, %v422_v0  ;;  %v716_v61 = vsub.f32 %v706_v12, %v712_v15 }
 0x192   :  { %v428_v62 = vadd.f32 1e-07, %v426_v16  ;;  %v718_v18 = vadd.f32 1e-07, %v716_v61 }
 0x194   :  { %433 = vrot.lane.b32.xlu2 %v428_v62, %s1340_s17  ;;  %723 = vrot.lane.b32.xlu1 %v718_v18, %s1340_s17  ;;  %v1191_v10 = vpop.eup %1190 }
 0x195   :  { %v1193_v12 = vpop.eup %1192  ;;  %v230_v15 = vadd.f32 1.0, %v1191_v10  ;;  %v233_v3 = vmul.f32 -0.5, %v1191_v10 }
 0x196   :  { %v239_v16 = vadd.f32 1.0, %v1193_v12 }
 0x197   :  { %v999_v19 = vpop.permute.xlu2 %998  ;;  %v476_v49 = vpop.permute.xlu1 %475  ;;  %1194 = vlog2.f32 %v230_v15  ;;  %v234_v24 = vadd.f32 1.0, %v233_v3 }
 0x198   :  { %v1004_v22 = vsub.f32 %v994_v29, %v999_v19  ;;  %v481_v9 = vmul.f32 %v476_v49, %v1629_v14  ;;  %v1738_v14 = vld [vmem:[%s2393_s4 + $0x18] sm:$0xff]  ;;  %1196 = vlog2.f32 %v239_v16  ;;  %v242_v29 = vmul.f32 -0.5, %v1193_v12 }
 0x19a   :  { %v1006_v27 = vadd.f32 1e-07, %v1004_v22  ;;  %v1728_v61 = vadd.f32 1e-07, %v481_v9 }
 0x19c   :  { %1010 = vrot.lane.b32.xlu2 %v1006_v27, %s1340_s17  ;;  %1198 = vrcp.f32 %v1728_v61  ;;  %v243_v27 = vadd.f32 1.0, %v242_v29  ;;  %vm492_vm13 = vweird.f32 %v1728_v61  ;;  %v2443_v25 = vand.u32 2147483648, %v1728_v61 }
 0x19e   :  { %v244_v49 = vmul.f32 %v1193_v12, %v243_v27 }
 0x19f   :  { %v710_v35 = vpop.permute.xlu0 %709  ;;  %v478_v1 = vpop.permute.xlu2 %477 }
 0x1a0   :  { %v715_v37 = vsub.f32 %v705_v30, %v710_v35  ;;  %v768_v7 = vpop.permute.xlu1 %767  ;;  %v482_v11 = vmul.f32 %v478_v1, %v1643_v59  ;;  %v546_v59 = vand.u32 2147483647, %v1738_v14  ;;  %v1195_v35 = vpop.eup %1194 }
 0x1a1   :  { %v772_v0 = vmul.f32 %v768_v7, %v1641_v57  ;;  %v545_v57 = vand.u32 2147483647, %v1733_v60 }
 0x1a2   :  { %v717_v32 = vadd.f32 1e-07, %v715_v37  ;;  %v1740_v62 = vadd.f32 1e-07, %v482_v11  ;;  %v548_v22 = vsub.f32 0.0, %v546_v59 }
 0x1a3   :  { %v1744_v18 = vadd.f32 1e-07, %v772_v0  ;;  %v547_v19 = vsub.f32 0.0, %v545_v57  ;;  %v236_v37 = vand.u32 2147483647, %v1191_v10 }
 0x1a4   :  { %721 = vrot.lane.b32.xlu0 %v717_v32, %s1340_s17  ;;  %1200 = vrcp.f32 %v1740_v62  ;;  %v245_v32 = vand.u32 2147483647, %v1193_v12  ;;  %v551_v8 = vmul.f32 1.442695, %v548_v22 }
 0x1a5   :  { %v549_v30 = vmul.f32 1.442695, %v547_v19  ;;  %1202 = vrcp.f32 %v1744_v18  ;;  %vm237_vm2 = vcmp.lt.f32.partialorder %v236_v37, 0.0004427343 }
 0x1a6   :  { %vm246_vm6 = vcmp.lt.f32.partialorder %v245_v32, 0.0004427343  ;;  %v1781_v32 = vld [vmem:[%s2393_s4 + $0x20] sm:$0xff] }
 0x1a7   :  { %1204 = vpow2.f32 %v549_v30 }
 0x1a8   :  { %1206 = vpow2.f32 %v551_v8 }
 0x1af   :  { %v1001_v43 = vpop.permute.xlu0 %1000 }
 0x1b0   :  { %v1005_v46 = vsub.f32 %v995_v42, %v1001_v43  ;;  %v1197_v42 = vpop.eup %1196  ;;  %v232_v43 = vmul.f32 0.6931472, %v1195_v35 }
 0x1b1   :  { %v241_v47 = vmul.f32 0.6931472, %v1197_v42  ;;  %v1751_v55 = vpop.eup %1198 }
 0x1b2   :  { %v1007_v50 = vadd.f32 1e-07, %v1005_v46  ;;  %v235_v46 = vmul.f32 %v1191_v10, %v234_v24  ;;  %v1755_v7 = vpop.eup %1200  ;;  %v488_v16 = vmul.f32 %v1751_v55, %v1728_v61 }
 0x1b3   :  { %v247_v56 = vsel %vm246_vm6, %v244_v49, %v241_v47  ;;  %v1760_v11 = vpop.eup %1202  ;;  %v503_v19 = vmul.f32 %v1755_v7, %v1740_v62  ;;  %vm508_vm6 = vweird.f32 %v1755_v7 }
 0x1b4   :  { %1012 = vrot.lane.b32.xlu0 %v1007_v50, %s1340_s17  ;;  %v1055_v50 = vpop.permute.xlu2 %1054  ;;  %v238_v54 = vsel %vm237_vm2, %v235_v46, %v232_v43  ;;  %v1758_v10 = vadd.f32 %v247_v56, %v221_v52  ;;  %v1205_v0 = vpop.eup %1204  ;;  %v1774_v22 = vmul.f32 %v1760_v11, %v1744_v18  ;;  %v489_v30 = vsub.f32 1.0, %v488_v16 }
 0x1b5   :  { %v1753_v1 = vadd.f32 %v238_v54, %v220_v51  ;;  %v1060_v9 = vmul.f32 %v1055_v50, %v1635_v36  ;;  %v553_v59 = vadd.f32 1.0, %v1205_v0  ;;  %v1207_v3 = vpop.eup %1206  ;;  %v556_v8 = vmul.f32 -0.5, %v1205_v0 }
 0x1b6   :  { %v255_v15 = vsub.f32 %v1720_v2, %v1758_v10  ;;  %v562_v24 = vadd.f32 1.0, %v1207_v3  ;;  %v565_v42 = vmul.f32 -0.5, %v1207_v3  ;;  %v834_v43 = vand.u32 2147483647, %v1781_v32 }
 0x1b7   :  { %v254_v12 = vsub.f32 %v1715_v48, %v1753_v1  ;;  %v1768_v29 = vadd.f32 1e-07, %v1060_v9  ;;  %v766_v27 = vpop.permute.xlu0 %765  ;;  %v504_v46 = vsub.f32 1.0, %v503_v19  ;;  %v794_v49 = vsub.f32 1.0, %v1774_v22 }
 0x1b8   :  { %v258_v36 = vmul.f32 1.442695, %v255_v15  ;;  %v771_v50 = vmul.f32 %v766_v27, %v1633_v34  ;;  %v557_v51 = vadd.f32 1.0, %v556_v8  ;;  %v566_v52 = vadd.f32 1.0, %v565_v42 }
 0x1b9   :  { %v256_v57 = vmul.f32 1.442695, %v254_v12  ;;  %v836_v47 = vsub.f32 0.0, %v834_v43  ;;  %v2397_v56 = vmov 0.0   ;;  %v559_v15 = vand.u32 2147483647, %v1205_v0 }
 0x1ba   :  { %v1791_v9 = vsel %vm212_vm0, 1.0, %v2397_v56  ;;  %v1797_v12 = vsel %vm213_vm1, 1.0, %v2397_v56  ;;  %v568_v16 = vand.u32 2147483647, %v1207_v3  ;;  %v558_v19 = vmul.f32 %v1205_v0, %v557_v51 }
 0x1bb   :  { %1208 = vpow2.f32 %v256_v57  ;;  %2432 = vst [vmem:[#allocation19_spill] sm:$0xff] %v1797_v12  ;;  %v1800_v57 = vsub.f32 1.0, %v1791_v9  ;;  %v544_v27 = vmax.f32 %v1738_v14, 0.0  ;;  %vm1807_vm9 = vcmp.lt.f32.partialorder %v559_v15, 0.0004427343 }
 0x1bc   :  { %1210 = vpow2.f32 %v258_v36  ;;  %v567_v56 = vmul.f32 %v1207_v3, %v566_v52  ;;  %vm569_vm0 = vcmp.lt.f32.partialorder %v568_v16, 0.0004427343  ;;  %vm493_vm1 = vweird.f32 %v1751_v55 }
 0x1bd   :  { %1212 = vlog2.f32 %v553_v59  ;;  %2433 = vst [vmem:[#allocation20_spill] sm:$0xff] %v1800_v57  ;;  %v1803_v59 = vsub.f32 1.0, %v1797_v12  ;;  %vm507_vm2 = vweird.f32 %v1740_v62  ;;  %v1825_v38 = vadd.f32 1e-07, %v771_v50 }
 0x1be   :  { %1214 = vlog2.f32 %v562_v24  ;;  %v543_v24 = vmax.f32 %v1733_v60, 0.0  ;;  %v838_v50 = vmul.f32 1.442695, %v836_v47  ;;  %v251_v39 = vmul.f32 %v1797_v12, %v1720_v2 }
 0x1bf   :  { %1216 = vrcp.f32 %v1768_v29  ;;  %2434 = vst [vmem:[#allocation21_spill] sm:$0xff] %v1803_v59 }
 0x1c1   :  { %v1209_v54 = vpop.eup %1208 }
 0x1c2   :  { %v1211_v34 = vpop.eup %1210  ;;  %v264_v36 = vsub.f32 1.0, %v1209_v54  ;;  %v260_v8 = vmul.f32 %v1209_v54, %v1791_v9 }
 0x1c3   :  { %v1213_v4 = vpop.eup %1212  ;;  %v265_v22 = vsub.f32 1.0, %v1211_v34  ;;  %v261_v42 = vmul.f32 %v1211_v34, %v1797_v12  ;;  %v490_v34 = vmul.f32 %v1751_v55, %v489_v30  ;;  %v1840_v30 = vld [vmem:[%s2393_s4 + $0x28] sm:$0xff] }
 0x1c4   :  { %v1215_v20 = vpop.eup %1214  ;;  %v266_v43 = vmul.f32 %v264_v36, %v1800_v57  ;;  %v555_v37 = vmul.f32 0.6931472, %v1213_v4 }
 0x1c5   :  { %v1814_v35 = vpop.eup %1216  ;;  %v267_v0 = vmul.f32 %v265_v22, %v1803_v59  ;;  %v564_v51 = vmul.f32 0.6931472, %v1215_v20  ;;  %v505_v22 = vmul.f32 %v1755_v7, %v504_v46  ;;  %v513_v46 = vand.u32 2147483648, %v1740_v62 }
 0x1c6   :  { %v268_v15 = vadd.f32 %v266_v43, %v260_v8  ;;  %v561_v54 = vsel %vm1807_vm9, %v558_v19, %v555_v37  ;;  %v795_v37 = vmul.f32 %v1760_v11, %v794_v49  ;;  %v835_v20 = vand.u32 2147483647, %v1840_v30 }
 0x1c7   :  { %v269_v36 = vadd.f32 %v267_v0, %v261_v42  ;;  %v570_v4 = vsel %vm569_vm0, %v567_v56, %v564_v51  ;;  %v1823_v40 = vadd.f32 %v561_v54, %v543_v24  ;;  %v511_v56 = vand.u32 2147483647, %v1740_v62  ;;  %vm1864_vm0 = vmor %vm492_vm13, %vm493_vm1 }
 0x1c8   :  { %v1828_v3 = vsub.f32 1.0, %v268_v15  ;;  %v1830_v52 = vadd.f32 %v570_v4, %v544_v27  ;;  %v491_v24 = vadd.f32 %v1751_v55, %v490_v34  ;;  %v506_v47 = vadd.f32 %v1755_v7, %v505_v22 }
 0x1c9   :  { %v1832_v16 = vsub.f32 1.0, %v269_v36  ;;  %v577_v5 = vsub.f32 %v1733_v60, %v1823_v40  ;;  %v1067_v8 = vmul.f32 %v1814_v35, %v1768_v29  ;;  %v796_v42 = vadd.f32 %v1760_v11, %v795_v37 }
 0x1ca   :  { %1218 = vrsqrt.f32 %v1828_v3  ;;  %v578_v19 = vsub.f32 %v1738_v14, %v1830_v52  ;;  %v2437_v43 = vmov 0.0   ;;  %v801_v15 = vand.u32 2147483647, %v1744_v18 }
 0x1cb   :  { %1220 = vrsqrt.f32 %v1832_v16  ;;  %v579_v49 = vmul.f32 1.442695, %v577_v5  ;;  %v107_v0 = vsel %vm1475_vm5, 1.0, %v2437_v43  ;;  %v803_v54 = vand.u32 2147483648, %v1744_v18  ;;  %vm1882_vm5 = vmor %vm507_vm2, %vm508_vm6 }
 0x1cc   :  { %1222 = vrcp.f32 %v1825_v38  ;;  %v581_v27 = vmul.f32 1.442695, %v578_v19  ;;  %v2440_v34 = vand.u32 2147483647, %v1728_v61  ;;  %v499_v4 = vor.u32 1.1754944e-38, %v2443_v25 }
 0x1cd   :  { %1224 = vpow2.f32 %v838_v50  ;;  %vm797_vm13 = vweird.f32 %v1744_v18  ;;  %v495_v37 = vsel %vm1864_vm0, %v1751_v55, %v491_v24  ;;  %v510_v50 = vsel %vm1882_vm5, %v1755_v7, %v506_v47 }
 0x1ce   :  { %1226 = vpow2.f32 %v579_v49  ;;  %vm1872_vm9 = vcmp.eq.f32.partialorder %v2440_v34, 8.507059e+37  ;;  %v514_v19 = vor.u32 1.1754944e-38, %v513_v46  ;;  %vm2446_vm1 = vweird.f32 %v1760_v11  ;;  %v1057_v46 = vpop.permute.xlu0 %1056 }
 0x1cf   :  { %1228 = vpow2.f32 %v581_v27  ;;  %vm1895_vm14 = vmor %vm797_vm13, %vm2446_vm1  ;;  %v837_v34 = vsub.f32 0.0, %v835_v20  ;;  %v1068_v25 = vsub.f32 1.0, %v1067_v8  ;;  %v133_v28 = vsel %vm1491_vm7, 1.0, %v107_v0 }
 0x1d0   :  { %v1219_v5 = vpop.eup %1218  ;;  %v800_v55 = vsel %vm1895_vm14, %v1760_v11, %v796_v42  ;;  %vm512_vm2 = vcmp.eq.f32.partialorder %v511_v56, 8.507059e+37  ;;  %vm802_vm6 = vcmp.eq.f32.partialorder %v801_v15, 8.507059e+37  ;;  %v804_v47 = vor.u32 1.1754944e-38, %v803_v54 }
 0x1d1   :  { %v1221_v27 = vpop.eup %1220  ;;  %v273_v51 = vmul.f32 %v1219_v5, %v1828_v3  ;;  %v1912_v33 = vsel %vm1872_vm9, %v499_v4, %v495_v37  ;;  %v1914_v8 = vsel %vm512_vm2, %v514_v19, %v510_v50  ;;  %v159_v42 = vsel %vm1512_vm10, 1.0, %v133_v28 }
 0x1d2   :  { %v1905_v7 = vpop.eup %1222  ;;  %v285_v24 = vmul.f32 %v1221_v27, %v1832_v16  ;;  %v1919_v49 = vsel %vm802_vm6, %v804_v47, %v800_v55  ;;  %v840_v15 = vmul.f32 1.442695, %v837_v34  ;;  %v1061_v36 = vmul.f32 %v1057_v46, %v1649_v63 }
 0x1d3   :  { %v1908_v20 = vpop.eup %1224  ;;  %v274_v0 = vmul.f32 %v1219_v5, %v273_v51  ;;  %v1923_v26 = vmul.f32 %v1905_v7, %v1825_v38  ;;  %v1069_v37 = vmul.f32 %v1814_v35, %v1068_v25  ;;  %v106_v50 = vsel %vm1452_vm3, 1.0, %v2437_v43 }
 0x1d4   :  { %v1227_v11 = vpop.eup %1226  ;;  %v286_v56 = vmul.f32 %v1221_v27, %v285_v24  ;;  %v842_v28 = vadd.f32 1.0, %v1908_v20  ;;  %v1077_v19 = vand.u32 2147483648, %v1768_v29  ;;  %v185_v34 = vsel %vm1531_vm12, 1.0, %v159_v42 }
 0x1d5   :  { %v1229_v54 = vpop.eup %1228  ;;  %v275_v4 = vmul.f32 0.5, %v274_v0  ;;  %v585_v55 = vsub.f32 1.0, %v1227_v11  ;;  %v788_v24 = vand.u32 2147483648, %v1825_v38  ;;  %v132_v25 = vsel %vm1463_vm4, 1.0, %v106_v50 }
 0x1d6   :  { %v287_v44 = vmul.f32 0.5, %v286_v56  ;;  %v586_v17 = vsub.f32 1.0, %v1229_v54  ;;  %1230 = vpow2.f32 %v840_v15  ;;  %v779_v43 = vsub.f32 1.0, %v1923_v26 }
 0x1d7   :  { %v276_v51 = vsub.f32 1.5, %v275_v4  ;;  %v1940_v47 = vadd.f32 1e-07, %v1061_v36  ;;  %v1944_v58 = vadd.f32 %v1814_v35, %v1069_v37  ;;  %v1948_v0 = vsel %vm1558_vm15, 1.0, %v185_v34 }
 0x1d8   :  { %v288_v46 = vsub.f32 1.5, %v287_v44  ;;  %v158_v21 = vsel %vm1503_vm8, 1.0, %v132_v25  ;;  %v583_v15 = vmul.f32 %v1227_v11, %v1791_v9  ;;  %v1954_v36 = vmul.f32 %v1229_v54, %v1797_v12 }
 0x1d9   :  { %v277_v42 = vmul.f32 %v1219_v5, %v276_v51  ;;  %v587_v4 = vmul.f32 %v585_v55, %v1800_v57  ;;  %vm279_vm3 = vcmp.eq.f32.partialorder %v1828_v3, inf  ;;  %v282_v6 = vand.u32 2147483648, %v1828_v3  ;;  %v1263_v51 = vld [vmem:[%s2394_s5 + $0x8] sm:$0xff] }
 0x1da   :  { %v289_v56 = vmul.f32 %v1221_v27, %v288_v46  ;;  %v588_v5 = vmul.f32 %v586_v17, %v1803_v59  ;;  %v250_v27 = vmul.f32 %v1791_v9, %v1715_v48  ;;  %vm281_vm4 = vcmp.eq.f32.partialorder %v1828_v3, 0.0  ;;  %v1262_v48 = vld [vmem:[%s2394_s5] sm:$0xff] }
 0x1db   :  { %v278_v37 = vmul.f32 %v277_v42, %v1828_v3  ;;  %v184_v50 = vsel %vm1524_vm11, 1.0, %v158_v21  ;;  %vm291_vm7 = vcmp.eq.f32.partialorder %v1832_v16, inf  ;;  %v326_v2 = vsub.f32 %v1262_v48, %v1597_v41 }
 0x1dc   :  { %v290_v11 = vmul.f32 %v289_v56, %v1832_v16  ;;  %v1967_v54 = vpop.eup %1230  ;;  %v327_v53 = vsub.f32 %v1263_v51, %v1605_v45  ;;  %vm293_vm8 = vcmp.eq.f32.partialorder %v1832_v16, 0.0  ;;  %v589_v55 = vadd.f32 %v587_v4, %v583_v15 }
 0x1dd   :  { %v280_v44 = vsel %vm279_vm3, %v1828_v3, %v278_v37  ;;  %vm1072_vm11 = vweird.f32 %v1814_v35  ;;  %vm2449_vm12 = vnez %v2425_v13  ;;  %v252_v15 = vsub.f32 %v1753_v1, %v250_v27 }
 0x1de   :  { %v283_v17 = vsel %vm281_vm4, %v282_v6, %v280_v44  ;;  %v292_v42 = vsel %vm291_vm7, %v1832_v16, %v290_v11  ;;  %v1994_v21 = vsel %vm2449_vm12, 1.0, %v184_v50  ;;  %v253_v4 = vsub.f32 %v1758_v10, %v251_v39 }
 0x1df   :  { %v328_v48 = vand.u32 2147483647, %v326_v2  ;;  %v329_v51 = vand.u32 2147483647, %v327_v53  ;;  %vm1071_vm14 = vweird.f32 %v1768_v29  ;;  %v296_v6 = vmul.f32 %v283_v17, %v1828_v3 }
 0x1e0   :  { %v298_v44 = vmul.f32 0.25, %v1791_v9  ;;  %vm332_vm9 = vcmask 31744   ;;  %v299_v39 = vmul.f32 0.25, %v1797_v12  ;;  %v301_v3 = vmul.f32 0.75, %v1803_v59  ;;  %vm2045_vm1 = vmor %vm1071_vm14, %vm1072_vm11 }
 0x1e1   :  { %v330_v50 = vmul.f32 %v328_v48, %v1994_v21  ;;  %v331_v1 = vmul.f32 %v329_v51, %v1948_v0  ;;  %v304_v53 = vmul.f32 %v296_v6, %v252_v15  ;;  %v590_v6 = vadd.f32 %v588_v5, %v1954_v36 }
 0x1e2   :  { %vm308_vm13 = vcmask 130048   ;;  %vm783_vm12 = vweird.f32 %v1905_v7 }
 0x1ee   :  { %v1935_v63 = vpop.permute.xlu2 %433 }
 0x1ef   :  { %1232 = vrcp.f32 %v1935_v63  ;;  %vm457_vm10 = vweird.f32 %v1935_v63  ;;  %v463_v56 = vand.u32 2147483648, %v1935_v63  ;;  %v461_v10 = vand.u32 2147483647, %v1935_v63 }
 0x1f0   :  { %1234 = vlog2.f32 %v842_v28  ;;  %v294_v28 = vand.u32 2147483648, %v1832_v16 }
 0x1f1   :  { %v464_v51 = vor.u32 1.1754944e-38, %v463_v56  ;;  %vm462_vm5 = vcmp.eq.f32.partialorder %v461_v10, 8.507059e+37 }
 0x1f2   :  { %v295_v22 = vsel %vm293_vm8, %v294_v28, %v292_v42  ;;  %v300_v28 = vmul.f32 0.75, %v1800_v57  ;;  %vm523_vm8 = vcmask 7168  }
 0x1f3   :  { %v297_v11 = vmul.f32 %v295_v22, %v1832_v16  ;;  %v333_v16 = vsel %vm332_vm9, %v330_v50, 0.0  ;;  %v334_v22 = vsel %vm332_vm9, %v331_v1, 0.0  ;;  %v845_v50 = vmul.f32 -0.5, %v1908_v20 }
 0x1f4   :  { %v335_v17 = vadd.f32 %v334_v22, %v333_v16  ;;  %v2019_v42 = vadd.f32 %v300_v28, %v298_v44  ;;  %v780_v44 = vmul.f32 %v1905_v7, %v779_v43  ;;  %v2051_v43 = vor.u32 1.1754944e-38, %v1077_v19 }
 0x1f5   :  { %v1233_v34 = vpop.eup %1232  ;;  %v305_v48 = vmul.f32 %v297_v11, %v253_v4  ;;  %v2034_v11 = vsub.f32 1.0, %v589_v55  ;;  %v2054_v1 = vsub.f32 1.0, %v590_v6 }
 0x1f6   :  { %v1983_v25 = vpop.eup %1234  ;;  %v453_v46 = vmul.f32 %v1233_v34, %v1935_v63  ;;  %vm458_vm15 = vweird.f32 %v1233_v34  ;;  %v2005_v27 = vpop.permute.xlu2 %1010  ;;  %336 = vadd.xlane.f32.xlu2 %v335_v17  ;;  %v306_v56 = vmul.f32 %v304_v53, %v2019_v42 }
 0x1f7   :  { %vm2015_vm0 = vmor %vm457_vm10, %vm458_vm15  ;;  %1236 = vrcp.f32 %v2005_v27  ;;  %vm600_vm10 = vcmp.eq.f32.partialorder %v2034_v11, inf  ;;  %vm602_vm11 = vcmp.eq.f32.partialorder %v2034_v11, 0.0 }
 0x1f8   :  { %v454_v37 = vsub.f32 1.0, %v453_v46  ;;  %v309_v55 = vsel %vm308_vm13, %v306_v56, 0.0  ;;  %v2096_v56 = vmul.f32 0.6931472, %v1983_v25  ;;  %v2111_v25 = vmul.f32 %v1738_v14, %v1797_v12 }
 0x1fa   :  { %v455_v13 = vmul.f32 %v1233_v34, %v454_v37  ;;  %v2021_v37 = vadd.f32 %v301_v3, %v299_v39  ;;  %v2068_v39 = vadd.f32 %v1905_v7, %v780_v44  ;;  %v2088_v44 = vmul.f32 %v1733_v60, %v1791_v9 }
 0x1fc   :  { %v456_v2 = vadd.f32 %v1233_v34, %v455_v13  ;;  %v307_v36 = vmul.f32 %v305_v48, %v2021_v37 }
 0x1fd   :  { %v2070_v28 = vpop.eup %1236 }
 0x1fe   :  { %v2024_v13 = vpop.permute.xlu1 %431  ;;  %v460_v15 = vsel %vm2015_vm0, %v1233_v34, %v456_v2  ;;  %v486_v34 = vsub.f32 %v1740_v62, %v1935_v63  ;;  %v2058_v62 = vor.u32 1.1754944e-38, %v788_v24  ;;  %v310_v19 = vsel %vm308_vm13, %v307_v36, 0.0 }
 0x1ff   :  { %1238 = vrcp.f32 %v2024_v13  ;;  %v465_v4 = vsel %vm462_vm5, %v464_v51, %v460_v15  ;;  %v311_v3 = vadd.f32 %v310_v19, %v309_v55  ;;  %v846_v24 = vadd.f32 1.0, %v845_v50 }
 0x200   :  { %1240 = vrcp.f32 %v1940_v47  ;;  %v466_v10 = vmul.f32 %v465_v4, %v1682_v31  ;;  %v848_v2 = vand.u32 2147483647, %v1908_v20  ;;  %v446_v22 = vand.u32 2147483647, %v2024_v13 }
 0x201   :  { %1242 = vrsqrt.f32 %v2034_v11  ;;  %v448_v53 = vand.u32 2147483648, %v2024_v13  ;;  %v485_v31 = vsub.f32 %v1728_v61, %v2024_v13  ;;  %v516_v46 = vmul.f32 %v1914_v8, %v486_v34  ;;  %312 = vadd.xlane.f32.xlu1 %v311_v3 }
 0x202   :  { %1244 = vrsqrt.f32 %v2054_v1  ;;  %v851_v15 = vadd.f32 1.0, %v1967_v54  ;;  %v2093_v8 = vmul.f32 %v2070_v28, %v2005_v27  ;;  %v2099_v50 = vmul.f32 %v1908_v20, %v846_v24 }
 0x203   :  { %v518_v6 = vsub.f32 %v466_v10, %v516_v46  ;;  %vm442_vm2 = vweird.f32 %v2024_v13  ;;  %v449_v36 = vor.u32 1.1754944e-38, %v448_v53  ;;  %vm2104_vm6 = vcmp.eq.f32.partialorder %v446_v22, 8.507059e+37 }
 0x204   :  { %v501_v55 = vmul.f32 %v1912_v33, %v485_v31  ;;  %v854_v22 = vmul.f32 -0.5, %v1967_v54  ;;  %vm2119_vm4 = vcmp.lt.f32.partialorder %v848_v2, 0.0004427343  ;;  %v857_v63 = vand.u32 2147483647, %v1967_v54 }
 0x205   :  { %v1239_v16 = vpop.eup %1238  ;;  %v520_v20 = vsub.f32 1.0, %v518_v6  ;;  %vm782_vm0 = vweird.f32 %v1825_v38 }
 0x206   :  { %v438_v17 = vmul.f32 %v1239_v16, %v2024_v13  ;;  %v2080_v48 = vpop.permute.xlu1 %723  ;;  %v2101_v34 = vpop.eup %1240  ;;  %vm443_vm3 = vweird.f32 %v1239_v16  ;;  %v855_v33 = vadd.f32 1.0, %v854_v22  ;;  %vm2160_vm5 = vcmp.lt.f32.partialorder %v857_v63, 0.0004427343 }
 0x207   :  { %1246 = vrcp.f32 %v2080_v48  ;;  %v1243_v10 = vpop.eup %1242  ;;  %vm444_vm7 = vmor %vm442_vm2, %vm443_vm3  ;;  %vm747_vm14 = vweird.f32 %v2080_v48  ;;  %vm612_vm2 = vcmp.eq.f32.partialorder %v2054_v1, inf  ;;  %v2474_v26 = vand.u32 2147483648, %v2080_v48 }
 0x208   :  { %v439_v4 = vsub.f32 1.0, %v438_v17  ;;  %1248 = vlog2.f32 %v851_v15  ;;  %v594_v24 = vmul.f32 %v1243_v10, %v2034_v11  ;;  %v1245_v53 = vpop.eup %1244  ;;  %v2463_v17 = vmax.f32 %v1781_v32, 0.0 }
 0x209   :  { %v606_v6 = vmul.f32 %v1245_v53, %v2054_v1 }
 0x20a   :  { %v440_v19 = vmul.f32 %v1239_v16, %v439_v4  ;;  %v595_v15 = vmul.f32 %v1243_v10, %v594_v24  ;;  %v1264_v4 = vld [vmem:[%s2394_s5 + $0x10] sm:$0xff] }
 0x20b   :  { %v641_v2 = vsub.f32 %v1264_v4, %v1597_v41  ;;  %v607_v4 = vmul.f32 %v1245_v53, %v606_v6 }
 0x20c   :  { %v441_v46 = vadd.f32 %v1239_v16, %v440_v19  ;;  %v1265_v19 = vld [vmem:[%s2394_s5 + $0x18] sm:$0xff]  ;;  %v596_v5 = vmul.f32 0.5, %v595_v15  ;;  %v2475_v15 = vsub.f32 %v1823_v40, %v2088_v44  ;;  %v776_v44 = vsub.f32 %v1744_v18, %v2080_v48 }
 0x20d   :  { %v2123_v14 = vpop.eup %1246  ;;  %v642_v3 = vsub.f32 %v1265_v19, %v1605_v45  ;;  %v643_v61 = vand.u32 2147483647, %v641_v2 }
 0x20e   :  { %v743_v13 = vmul.f32 %v2123_v14, %v2080_v48  ;;  %v445_v24 = vsel %vm444_vm7, %v1239_v16, %v441_v46  ;;  %v1249_v51 = vpop.eup %1248  ;;  %v856_v16 = vmul.f32 %v1967_v54, %v855_v33  ;;  %v597_v22 = vsub.f32 1.5, %v596_v5 }
 0x20f   :  { %v450_v31 = vsel %vm2104_vm6, %v449_v36, %v445_v24  ;;  %v644_v19 = vand.u32 2147483647, %v642_v3  ;;  %v608_v46 = vmul.f32 0.5, %v607_v4  ;;  %v645_v12 = vmul.f32 %v643_v61, %v1994_v21 }
 0x210   :  { %v744_v59 = vsub.f32 1.0, %v743_v13  ;;  %v451_v57 = vmul.f32 %v450_v31, %v1669_v23  ;;  %v853_v60 = vmul.f32 0.6931472, %v1249_v51  ;;  %v2458_v36 = vand.u32 2147483647, %v1768_v29 }
 0x211   :  { %v646_v23 = vmul.f32 %v644_v19, %v1948_v0  ;;  %v850_v54 = vsel %vm2119_vm4, %v2099_v50, %v2096_v56  ;;  %v598_v61 = vmul.f32 %v1243_v10, %v597_v22  ;;  %v609_v3 = vsub.f32 1.5, %v608_v46 }
 0x212   :  { %vm2150_vm15 = vcmp.eq.f32.partialorder %v2458_v36, 8.507059e+37  ;;  %v517_v6 = vsub.f32 %v451_v57, %v501_v55  ;;  %v745_v51 = vmul.f32 %v2123_v14, %v744_v59  ;;  %v647_v33 = vsel %vm332_vm9, %v645_v12, 0.0 }
 0x213   :  { %v522_v55 = vmul.f32 %v520_v20, %v1948_v0  ;;  %v648_v31 = vsel %vm332_vm9, %v646_v23, 0.0  ;;  %v859_v2 = vsel %vm2160_vm5, %v856_v16, %v853_v60  ;;  %v599_v56 = vmul.f32 %v598_v61, %v2034_v11 }
 0x214   :  { %v519_v57 = vsub.f32 1.0, %v517_v6  ;;  %v610_v63 = vmul.f32 %v1245_v53, %v609_v3  ;;  %v649_v50 = vadd.f32 %v648_v31, %v647_v33  ;;  %v2173_v13 = vadd.f32 %v850_v54, %v2463_v17 }
 0x215   :  { %vm614_vm6 = vcmp.eq.f32.partialorder %v2054_v1, 0.0  ;;  %v615_v10 = vand.u32 2147483648, %v2054_v1  ;;  %v746_v20 = vadd.f32 %v2123_v14, %v745_v51  ;;  %vm748_vm3 = vweird.f32 %v2123_v14 }
 0x216   :  { %v2175_v59 = vpop.permute.xlu0 %721  ;;  %v521_v12 = vmul.f32 %v519_v57, %v1994_v21  ;;  %650 = vadd.xlane.f32.xlu1 %v649_v50  ;;  %v2464_v53 = vmax.f32 %v1840_v30, 0.0  ;;  %v525_v19 = vsel %vm523_vm8, %v522_v55, 0.0  ;;  %v601_v16 = vsel %vm600_vm10, %v2034_v11, %v599_v56  ;;  %vm2209_vm7 = vmor %vm747_vm14, %vm748_vm3 }
 0x217   :  { %1250 = vrcp.f32 %v2175_v59  ;;  %v611_v22 = vmul.f32 %v610_v63, %v2054_v1  ;;  %v2465_v46 = vand.u32 2147483647, %v1825_v38  ;;  %v751_v36 = vand.u32 2147483647, %v2080_v48 }
 0x218   :  { %v2186_v24 = vadd.f32 %v859_v2, %v2464_v53  ;;  %v524_v4 = vsel %vm523_vm8, %v521_v12, 0.0  ;;  %v2468_v23 = vand.u32 2147483648, %v2034_v11  ;;  %v866_v5 = vsub.f32 %v1781_v32, %v2173_v13 }
 0x219   :  { %vm2196_vm4 = vcmp.eq.f32.partialorder %v2465_v46, 8.507059e+37  ;;  %v526_v6 = vadd.f32 %v525_v19, %v524_v4  ;;  %v576_v61 = vsub.f32 %v1830_v52, %v2111_v25  ;;  %v613_v3 = vsel %vm612_vm2, %v2054_v1, %v611_v22  ;;  %v2476_v19 = vld [vmem:[#allocation15_spill] sm:$0xff] }
 0x21a   :  { %v604_v54 = vsel %vm602_vm11, %v2468_v23, %v601_v16  ;;  %v2471_v57 = vsel %vm2045_vm1, %v1814_v35, %v1944_v58  ;;  %v2231_v31 = vmul.f32 %v2101_v34, %v1940_v47  ;;  %v616_v52 = vsel %vm614_vm6, %v615_v10, %v613_v3  ;;  %vm2242_vm1 = vmor %vm782_vm0, %vm783_vm12 }
 0x21b   :  { %v617_v33 = vmul.f32 %v604_v54, %v2034_v11  ;;  %v2227_v55 = vsel %vm2150_vm15, %v2051_v43, %v2471_v57  ;;  %527 = vadd.xlane.f32.xlu0 %v526_v6  ;;  %v750_v11 = vsel %vm2209_vm7, %v2123_v14, %v746_v20  ;;  %v867_v58 = vsub.f32 %v1840_v30, %v2186_v24 }
 0x21c   :  { %v754_v43 = vor.u32 1.1754944e-38, %v2474_v26  ;;  %v618_v25 = vmul.f32 %v616_v52, %v2054_v1  ;;  %v785_v2 = vsel %vm2242_vm1, %v1905_v7, %v2068_v39  ;;  %v1018_v63 = vsub.f32 1.0, %v2093_v8 }
 0x21d   :  { %v619_v14 = vmul.f32 %v617_v33, %v2475_v15  ;;  %v1251_v56 = vpop.eup %1250  ;;  %vm752_vm10 = vcmp.eq.f32.partialorder %v751_v36, 8.507059e+37  ;;  %v868_v50 = vmul.f32 1.442695, %v866_v5  ;;  %v870_v17 = vmul.f32 1.442695, %v867_v58  ;;  %v1267_v33 = vld [vmem:[%s2394_s5 + $0x28] sm:$0xff] }
 0x21e   :  { %v728_v12 = vmul.f32 %v1251_v56, %v2175_v59  ;;  %v620_v10 = vmul.f32 %v618_v25, %v576_v61  ;;  %v755_v20 = vsel %vm752_vm10, %v754_v43, %v750_v11  ;;  %v1083_v40 = vsub.f32 1.0, %v2231_v31  ;;  %v2479_v25 = vld [vmem:[#allocation19_spill] sm:$0xff] }
 0x21f   :  { %v621_v1 = vmul.f32 %v619_v14, %v2019_v42  ;;  %1252 = vpow2.f32 %v868_v50  ;;  %v1090_v7 = vand.u32 2147483647, %v1940_v47  ;;  %v1019_v4 = vmul.f32 %v2070_v28, %v1018_v63  ;;  %v2480_v14 = vld [vmem:[#allocation20_spill] sm:$0xff] }
 0x220   :  { %v729_v39 = vsub.f32 1.0, %v728_v12  ;;  %v622_v8 = vmul.f32 %v620_v10, %v2021_v37  ;;  %1254 = vpow2.f32 %v870_v17  ;;  %vm1021_vm11 = vweird.f32 %v2005_v27  ;;  %v2483_v63 = vld [vmem:[#allocation16_spill] sm:$0xff] }
 0x221   :  { %v623_v53 = vsel %vm308_vm13, %v621_v1, 0.0  ;;  %v756_v16 = vmul.f32 %v755_v20, %v2476_v19  ;;  %v790_v22 = vsel %vm2196_vm4, %v2058_v62, %v785_v2  ;;  %vm733_vm12 = vweird.f32 %v1251_v56  ;;  %v2484_v1 = vld [vmem:[#allocation21_spill] sm:$0xff] }
 0x222   :  { %v730_v18 = vmul.f32 %v1251_v56, %v729_v39  ;;  %v738_v48 = vand.u32 2147483648, %v2175_v59  ;;  %v624_v46 = vsel %vm308_vm13, %v622_v8, 0.0  ;;  %v736_v36 = vand.u32 2147483647, %v2175_v59 }
 0x223   :  { %v625_v6 = vadd.f32 %v624_v46, %v623_v53  ;;  %v775_v23 = vsub.f32 %v1825_v38, %v2175_v59  ;;  %v806_v54 = vmul.f32 %v1919_v49, %v776_v44  ;;  %vm1022_vm14 = vweird.f32 %v2070_v28  ;;  %v1266_v38 = vld [vmem:[%s2394_s5 + $0x20] sm:$0xff] }
 0x224   :  { %v1025_v5 = vand.u32 2147483647, %v2005_v27  ;;  %v731_v60 = vadd.f32 %v1251_v56, %v730_v18  ;;  %vm732_vm15 = vweird.f32 %v2175_v59  ;;  %v1020_v51 = vadd.f32 %v2070_v28, %v1019_v4  ;;  %vm2308_vm2 = vmor %vm1021_vm11, %vm1022_vm14 }
 0x225   :  { %v1253_v62 = vpop.eup %1252  ;;  %vm2283_vm0 = vmor %vm732_vm15, %vm733_vm12  ;;  %626 = vadd.xlane.f32.xlu2 %v625_v6  ;;  %v808_v3 = vsub.f32 %v756_v16, %v806_v54  ;;  %v930_v49 = vsub.f32 %v1266_v38, %v1597_v41  ;;  %v931_v59 = vsub.f32 %v1267_v33, %v1605_v45  ;;  %v739_v31 = vor.u32 1.1754944e-38, %v738_v48 }
 0x226   :  { %v1255_v57 = vpop.eup %1254  ;;  %v2295_v52 = vpop.permute.xlu0 %1012  ;;  %v735_v11 = vsel %vm2283_vm0, %v1251_v56, %v731_v60  ;;  %v872_v35 = vmul.f32 %v1253_v62, %v1791_v9  ;;  %v874_v58 = vsub.f32 1.0, %v1253_v62  ;;  %v1027_v26 = vand.u32 2147483648, %v2005_v27 }
 0x227   :  { %1256 = vrcp.f32 %v2295_v52  ;;  %vm737_vm5 = vcmp.eq.f32.partialorder %v736_v36, 8.507059e+37  ;;  %v791_v41 = vmul.f32 %v790_v22, %v775_v23  ;;  %v873_v15 = vmul.f32 %v1255_v57, %v2479_v25 }
 0x228   :  { %v740_v43 = vsel %vm737_vm5, %v739_v31, %v735_v11  ;;  %v875_v45 = vsub.f32 1.0, %v1255_v57  ;;  %v876_v2 = vmul.f32 %v874_v58, %v2480_v14  ;;  %v810_v17 = vsub.f32 1.0, %v808_v3 }
 0x229   :  { %v741_v50 = vmul.f32 %v740_v43, %v2483_v63  ;;  %v932_v12 = vand.u32 2147483647, %v930_v49  ;;  %v933_v10 = vand.u32 2147483647, %v931_v59  ;;  %vm1086_vm6 = vweird.f32 %v1940_v47 }
 0x22a   :  { %v877_v20 = vmul.f32 %v875_v45, %v2484_v1  ;;  %v878_v44 = vadd.f32 %v876_v2, %v872_v35  ;;  %v1024_v39 = vsel %vm2308_vm2, %v2070_v28, %v1020_v51  ;;  %v1084_v8 = vmul.f32 %v2101_v34, %v1083_v40  ;;  %v2485_v51 = vld [vmem:[#allocation17_spill] sm:$0xff] }
 0x22b   :  { %v1028_v53 = vor.u32 1.1754944e-38, %v1027_v26  ;;  %v807_v4 = vsub.f32 %v741_v50, %v791_v41  ;;  %v934_v19 = vmul.f32 %v932_v12, %v1994_v21  ;;  %v935_v16 = vmul.f32 %v933_v10, %v1948_v0  ;;  %v2488_v12 = vld [vmem:[#allocation18_spill] sm:$0xff] }
 0x22c   :  { %v879_v22 = vadd.f32 %v877_v20, %v873_v15  ;;  %v2321_v18 = vsub.f32 1.0, %v878_v44  ;;  %vm1026_vm3 = vcmp.eq.f32.partialorder %v1025_v5, 8.507059e+37  ;;  %v1064_v48 = vsub.f32 %v1768_v29, %v2005_v27 }
 0x22d   :  { %v1257_v46 = vpop.eup %1256  ;;  %v809_v36 = vsub.f32 1.0, %v807_v4  ;;  %v812_v6 = vmul.f32 %v810_v17, %v1948_v0  ;;  %v936_v28 = vsel %vm332_vm9, %v934_v19, 0.0  ;;  %v1029_v40 = vsel %vm1026_vm3, %v1028_v53, %v1024_v39 }
 0x22e   :  { %v1032_v23 = vmul.f32 %v1257_v46, %v2295_v52  ;;  %v2328_v54 = vsub.f32 1.0, %v879_v22  ;;  %1258 = vrsqrt.f32 %v2321_v18  ;;  %v937_v60 = vsel %vm332_vm9, %v935_v16, 0.0 }
 0x22f   :  { %v811_v5 = vmul.f32 %v809_v36, %v1994_v21  ;;  %v1085_v62 = vadd.f32 %v2101_v34, %v1084_v8  ;;  %vm1087_vm4 = vweird.f32 %v2101_v34  ;;  %v1092_v29 = vand.u32 2147483648, %v1940_v47 }
 0x230   :  { %v1033_v27 = vsub.f32 1.0, %v1032_v23  ;;  %1260 = vrsqrt.f32 %v2328_v54  ;;  %v1030_v61 = vmul.f32 %v1029_v40, %v2485_v51  ;;  %v1080_v3 = vmul.f32 %v2227_v55, %v1064_v48  ;;  %vm2345_vm7 = vmor %vm1086_vm6, %vm1087_vm4 }
 0x231   :  { %v1042_v38 = vand.u32 2147483648, %v2295_v52  ;;  %v813_v49 = vsel %vm523_vm8, %v811_v5, 0.0  ;;  %v814_v33 = vsel %vm523_vm8, %v812_v6, 0.0  ;;  %v938_v59 = vadd.f32 %v937_v60, %v936_v28 }
 0x232   :  { %v1034_v57 = vmul.f32 %v1257_v46, %v1033_v27  ;;  %vm1037_vm9 = vweird.f32 %v1257_v46  ;;  %v1040_v31 = vand.u32 2147483647, %v2295_v52  ;;  %v815_v11 = vadd.f32 %v814_v33, %v813_v49 }
 0x233   :  { %939 = vadd.xlane.f32.xlu1 %v938_v59  ;;  %v1089_v55 = vsel %vm2345_vm7, %v2101_v34, %v1085_v62  ;;  %vm1036_vm1 = vweird.f32 %v2295_v52  ;;  %v1065_v41 = vsub.f32 %v1940_v47, %v2295_v52  ;;  %v1096_v43 = vsub.f32 %v1030_v61, %v1080_v3 }
 0x234   :  { %v1259_v58 = vpop.eup %1258  ;;  %v1035_v26 = vadd.f32 %v1257_v46, %v1034_v57  ;;  %816 = vadd.xlane.f32.xlu2 %v815_v11  ;;  %vm1038_vm10 = vmor %vm1036_vm1, %vm1037_vm9  ;;  %v1043_v15 = vor.u32 1.1754944e-38, %v1042_v38  ;;  %v1093_v14 = vor.u32 1.1754944e-38, %v1092_v29  ;;  %vm1041_vm11 = vcmp.eq.f32.partialorder %v1040_v31, 8.507059e+37 }
 0x235   :  { %v883_v45 = vmul.f32 %v1259_v58, %v2321_v18  ;;  %vm1091_vm12 = vcmp.eq.f32.partialorder %v1090_v7, 8.507059e+37  ;;  %v1098_v1 = vsub.f32 1.0, %v1096_v43  ;;  %v862_v8 = vmul.f32 %v1781_v32, %v1791_v9 }
 0x236   :  { %v1261_v2 = vpop.eup %1260  ;;  %v1039_v56 = vsel %vm1038_vm10, %v1257_v46, %v1035_v26  ;;  %v1094_v17 = vsel %vm1091_vm12, %v1093_v14, %v1089_v55  ;;  %v863_v22 = vmul.f32 %v1840_v30, %v2479_v25  ;;  %vm889_vm14 = vcmp.eq.f32.partialorder %v2321_v18, inf }
 0x237   :  { %v884_v34 = vmul.f32 %v1259_v58, %v883_v45  ;;  %v895_v63 = vmul.f32 %v1261_v2, %v2328_v54  ;;  %v1044_v50 = vsel %vm1041_vm11, %v1043_v15, %v1039_v56  ;;  %v1095_v52 = vmul.f32 %v1094_v17, %v1065_v41 }
 0x238   :  { %v1045_v10 = vmul.f32 %v1044_v50, %v2488_v12  ;;  %v1100_v47 = vmul.f32 %v1098_v1, %v1994_v21  ;;  %v892_v48 = vand.u32 2147483648, %v2321_v18  ;;  %v864_v36 = vsub.f32 %v2173_v13, %v862_v8 }
 0x239   :  { %v885_v20 = vmul.f32 0.5, %v884_v34  ;;  %v896_v44 = vmul.f32 %v1261_v2, %v895_v63  ;;  %vm891_vm15 = vcmp.eq.f32.partialorder %v2321_v18, 0.0  ;;  %vm901_vm0 = vcmp.eq.f32.partialorder %v2328_v54, inf }
 0x23a   :  { %v1097_v39 = vsub.f32 %v1045_v10, %v1095_v52  ;;  %v904_v21 = vand.u32 2147483648, %v2328_v54  ;;  %v1102_v6 = vsel %vm523_vm8, %v1100_v47, 0.0  ;;  %vm903_vm5 = vcmp.eq.f32.partialorder %v2328_v54, 0.0 }
 0x23b   :  { %v886_v53 = vsub.f32 1.5, %v885_v20  ;;  %v897_v4 = vmul.f32 0.5, %v896_v44  ;;  %v865_v40 = vsub.f32 %v2186_v24, %v863_v22 }
 0x23c   :  { %v1099_v19 = vsub.f32 1.0, %v1097_v39 }
 0x23d   :  { %v887_v7 = vmul.f32 %v1259_v58, %v886_v53  ;;  %v898_v16 = vsub.f32 1.5, %v897_v4 }
 0x23e   :  { %v1101_v46 = vmul.f32 %v1099_v19, %v1948_v0 }
 0x23f   :  { %v888_v32 = vmul.f32 %v887_v7, %v2321_v18  ;;  %v899_v9 = vmul.f32 %v1261_v2, %v898_v16 }
 0x240   :  { %v1103_v30 = vsel %vm523_vm8, %v1101_v46, 0.0 }
 0x241   :  { %v890_v25 = vsel %vm889_vm14, %v2321_v18, %v888_v32  ;;  %v900_v28 = vmul.f32 %v899_v9, %v2328_v54  ;;  %v1104_v0 = vadd.f32 %v1103_v30, %v1102_v6 }
 0x242   :  { %v893_v13 = vsel %vm891_vm15, %v892_v48, %v890_v25 }
 0x243   :  { %v902_v23 = vsel %vm901_vm0, %v2328_v54, %v900_v28  ;;  %v906_v60 = vmul.f32 %v893_v13, %v2321_v18  ;;  %1105 = vadd.xlane.f32.xlu2 %v1104_v0 }
 0x244   :  { %v905_v5 = vsel %vm903_vm5, %v904_v21, %v902_v23 }
 0x245   :  { %v907_v62 = vmul.f32 %v905_v5, %v2328_v54  ;;  %v908_v29 = vmul.f32 %v906_v60, %v864_v36 }
 0x247   :  { %v909_v27 = vmul.f32 %v907_v62, %v865_v40  ;;  %v910_v51 = vmul.f32 %v908_v29, %v2019_v42 }
 0x249   :  { %v911_v61 = vmul.f32 %v909_v27, %v2021_v37  ;;  %v912_v3 = vsel %vm308_vm13, %v910_v51, 0.0 }
 0x24b   :  { %v913_v38 = vsel %vm308_vm13, %v911_v61, 0.0 }
 0x24c   :  { %v914_v49 = vadd.f32 %v913_v38, %v912_v3 }
 0x24e   :  { %915 = vadd.xlane.f32.xlu0 %v914_v49 }
 0x269   :  { %v337_v24 = vpop.xlane.xlu2 %336 }
 0x26a   :  { %v338_v33 = vrot.slane %v337_v24, 4 }
 0x26c   :  { %v339_v59 = vadd.f32 %v338_v33, %v337_v24 }
 0x26e   :  { %v340_v18 = vrot.slane %v339_v59, 2 }
 0x270   :  { %v341_v11 = vadd.f32 %v340_v18, %v339_v59 }
 0x272   :  { %v342_v55 = vrot.slane %v341_v11, 1 }
 0x274   :  { %v313_v57 = vpop.xlane.xlu1 %312  ;;  %v343_v26 = vadd.f32 %v342_v55, %v341_v11 }
 0x275   :  { %v314_v31 = vrot.slane %v313_v57, 4 }
 0x277   :  { %v315_v54 = vadd.f32 %v314_v31, %v313_v57 }
 0x279   :  { %v316_v35 = vrot.slane %v315_v54, 2 }
 0x27b   :  { %v317_v58 = vadd.f32 %v316_v35, %v315_v54 }
 0x27d   :  { %v318_v42 = vrot.slane %v317_v58, 1 }
 0x27f   :  { %v319_v37 = vadd.f32 %v318_v42, %v317_v58 }
 0x281   :  { %1163 = vpush %v319_v37 }
 0x282   :  { %1165 = vpush %v343_v26 }
 0x289   :  { %v651_v50 = vpop.xlane.xlu1 %650 }
 0x28a   :  { %v652_v12 = vrot.slane %v651_v50, 4 }
 0x28c   :  { %v653_v1 = vadd.f32 %v652_v12, %v651_v50 }
 0x28e   :  { %v528_v41 = vpop.xlane.xlu0 %527  ;;  %v654_v39 = vrot.slane %v653_v1, 2 }
 0x28f   :  { %v529_v43 = vrot.slane %v528_v41, 4 }
 0x290   :  { %v655_v4 = vadd.f32 %v654_v39, %v653_v1 }
 0x291   :  { %v530_v15 = vadd.f32 %v529_v43, %v528_v41 }
 0x292   :  { %v656_v47 = vrot.slane %v655_v4, 1 }
 0x293   :  { %v531_v45 = vrot.slane %v530_v15, 2 }
 0x294   :  { %v657_v16 = vadd.f32 %v656_v47, %v655_v4 }
 0x295   :  { %v532_v14 = vadd.f32 %v531_v45, %v530_v15 }
 0x297   :  { %v533_v2 = vrot.slane %v532_v14, 1 }
 0x298   :  { %v627_v56 = vpop.xlane.xlu2 %626 }
 0x299   :  { %v534_v34 = vadd.f32 %v533_v2, %v532_v14  ;;  %v628_v63 = vrot.slane %v627_v56, 4 }
 0x29b   :  { %1167 = vpush %v534_v34  ;;  %v629_v17 = vadd.f32 %v628_v63, %v627_v56 }
 0x29d   :  { %v630_v10 = vrot.slane %v629_v17, 2 }
 0x29f   :  { %v631_v52 = vadd.f32 %v630_v10, %v629_v17 }
 0x2a1   :  { %v632_v20 = vrot.slane %v631_v52, 1 }
 0x2a3   :  { %v633_v44 = vadd.f32 %v632_v20, %v631_v52 }
 0x2a5   :  { %1169 = vpush %v633_v44 }
 0x2a6   :  { %1171 = vpush %v657_v16  ;;  %v940_v36 = vpop.xlane.xlu1 %939 }
 0x2a7   :  { %v817_v8 = vpop.xlane.xlu2 %816  ;;  %v941_v9 = vrot.slane %v940_v36, 4 }
 0x2a8   :  { %v818_v53 = vrot.slane %v817_v8, 4 }
 0x2a9   :  { %v942_v6 = vadd.f32 %v941_v9, %v940_v36 }
 0x2aa   :  { %v819_v19 = vadd.f32 %v818_v53, %v817_v8 }
 0x2ab   :  { %v943_v25 = vrot.slane %v942_v6, 2 }
 0x2ac   :  { %v820_v7 = vrot.slane %v819_v19, 2 }
 0x2ad   :  { %v944_v40 = vadd.f32 %v943_v25, %v942_v6 }
 0x2ae   :  { %v821_v22 = vadd.f32 %v820_v7, %v819_v19 }
 0x2af   :  { %v945_v62 = vrot.slane %v944_v40, 1 }
 0x2b0   :  { %v822_v48 = vrot.slane %v821_v22, 1 }
 0x2b1   :  { %v946_v61 = vadd.f32 %v945_v62, %v944_v40 }
 0x2b2   :  { %v823_v46 = vadd.f32 %v822_v48, %v821_v22  ;;  %s1164_s5 = spop %1163 }
 0x2b3   :  { %s321_s28 = smul.f32 0.2, %s1164_s5  ;;  %s1166_s29 = spop %1165 }
 0x2b4   :  { %1173 = vpush %v823_v46  ;;  %s345_s30 = smul.f32 5.0, %s1166_s29 }
 0x2b5   :  { %323 = sst [smem:[#allocation10]] %s321_s28 }
 0x2b6   :  { %v1106_v32 = vpop.xlane.xlu2 %1105  ;;  %s346_s8 = smul.f32 0.2, %s345_s30 }
 0x2b7   :  { %v1107_v21 = vrot.slane %v1106_v32, 4 }
 0x2b8   :  { %348 = sst [smem:[#allocation10 + $0x1]] %s346_s8 }
 0x2b9   :  { %v1108_v30 = vadd.f32 %v1107_v21, %v1106_v32 }
 0x2bb   :  { %v1109_v28 = vrot.slane %v1108_v30, 2 }
 0x2bd   :  { %v1110_v60 = vadd.f32 %v1109_v28, %v1108_v30 }
 0x2bf   :  { %v1111_v27 = vrot.slane %v1110_v60, 1 }
 0x2c1   :  { %v916_v0 = vpop.xlane.xlu0 %915  ;;  %v1112_v38 = vadd.f32 %v1111_v27, %v1110_v60 }
 0x2c2   :  { %v917_v13 = vrot.slane %v916_v0, 4 }
 0x2c4   :  { %v918_v23 = vadd.f32 %v917_v13, %v916_v0 }
 0x2c6   :  { %v919_v5 = vrot.slane %v918_v23, 2 }
 0x2c8   :  { %v920_v29 = vadd.f32 %v919_v5, %v918_v23 }
 0x2ca   :  { %v921_v51 = vrot.slane %v920_v29, 1 }
 0x2cc   :  { %v922_v3 = vadd.f32 %v921_v51, %v920_v29  ;;  %s1168_s9 = spop %1167 }
 0x2cd   :  { %s536_s10 = smul.f32 2.0, %s1168_s9 }
 0x2ce   :  { %1175 = vpush %v922_v3 }
 0x2cf   :  { %1177 = vpush %v946_v61  ;;  %s537_s11 = smul.f32 0.2, %s536_s10 }
 0x2d0   :  { %1179 = vpush %v1112_v38 }
 0x2d1   :  { %539 = sst [smem:[#allocation10 + $0x2]] %s537_s11 }
 0x2d6   :  { %s1170_s6 = spop %1169 }
 0x2d7   :  { %s635_s12 = smul.f32 0.2, %s1170_s6  ;;  %s1172_s17 = spop %1171 }
 0x2d8   :  { %s659_s13 = smul.f32 5.0, %s1172_s17 }
 0x2d9   :  { %637 = sst [smem:[#allocation10 + $0x80]] %s635_s12 }
 0x2da   :  { %s660_s1 = smul.f32 0.2, %s659_s13 }
 0x2dc   :  { %662 = sst [smem:[#allocation10 + $0x81]] %s660_s1 }
 0x2e5   :  { %s1174_s14 = spop %1173 }
 0x2e6   :  { %s825_s15 = smul.f32 2.0, %s1174_s14 }
 0x2e8   :  { %s826_s0 = smul.f32 0.2, %s825_s15 }
 0x2ea   :  { %828 = sst [smem:[#allocation10 + $0x82]] %s826_s0 }
 0x2ff   :  { %s1176_s16 = spop %1175 }
 0x300   :  { %s924_s18 = smul.f32 0.2, %s1176_s16  ;;  %s1178_s19 = spop %1177 }
 0x301   :  { %s948_s20 = smul.f32 5.0, %s1178_s19  ;;  %s1180_s21 = spop %1179 }
 0x302   :  { %926 = sst [smem:[#allocation10 + $0x100]] %s924_s18  ;;  %s1114_s22 = smul.f32 2.0, %s1180_s21 }
 0x303   :  { %s949_s23 = smul.f32 0.2, %s948_s20 }
 0x304   :  { %s1115_s24 = smul.f32 0.2, %s1114_s22 }
 0x305   :  { %951 = sst [smem:[#allocation10 + $0x101]] %s949_s23 }
 0x306   :  { %1117 = sst [smem:[#allocation10 + $0x102]] %s1115_s24 }
 0x307   :  { %1126 = dma.smem_to_hbm %s1344_s25, 64, %s1124_s3, [#allocation3]  }
 0x308   :  { %1334 = dma.done.wait [#allocation3], 64  }
 0x309   :  { %1335 = vsyncadd [#allocation3], 4294967232 }
 0x30a   :  { %1131 = sfence }
 0x30b   :  { %1132 = vsyncpa [#allocation3], 1 }
 0x30c   :  { %1133 = vsyncpa [#allocation4], 1 }
 0x30d   :  { %1134 = vsyncpa [#allocation6], 1 }
 0x30e   :  { %1135 = vsyncpa [#allocation9], 1 }

</bundles_post_ra>
